<compile_context>
chip_gen: v6e
topology: v6e:2x2x1
jax: 0.10.0
libtpu: 0.0.40
codegen_flags: <defaults>
</compile_context>

<pallas_src>
import math

import jax
import jax.numpy as jnp
from jax.experimental import pallas as pl
from jax.experimental.pallas import tpu as pltpu


MAX_STD = 0.5
MIN_STD = 0.001


def _round_up(x, m):
    return ((x + m - 1) // m) * m


# ----------------------------------------------------------------------------
# Fused Pallas kernel: all GRU layers + Linear head + dist transform
# ----------------------------------------------------------------------------
def _make_fused_kernel(n_layers, seq_len, b_group, hidden, mxu_dtype):
    T, Bg, H = seq_len, b_group, hidden

    def kernel(*refs):
        # refs = [x, (w_ih_t, w_hh_t, b_gi, b_hn) * n_layers,
        #         w_out_t, b_out, a_col, b_col, out, seq_scratch, gi_scratch]
        x_ref = refs[0]
        layer_refs = refs[1:1 + 4 * n_layers]
        w_out_ref, b_out_ref, a_ref, b_ref = refs[1 + 4 * n_layers:5 + 4 * n_layers]
        out_ref = refs[5 + 4 * n_layers]
        seq_ref = refs[6 + 4 * n_layers]
        gi_ref = refs[7 + 4 * n_layers]

        cur = x_ref[...]                                    # (T*Bg, F), mxu dtype
        for l in range(n_layers):
            wih_ref, whh_ref, bgi_ref, bhn_ref = layer_refs[4 * l:4 * l + 4]

            # Hoisted input projection for the whole sequence, staged in VMEM so
            # its live range does not span the unrolled recurrence (vreg pressure).
            gi_ref[...] = (jnp.dot(cur, wih_ref[...],
                                   preferred_element_type=jnp.float32)
                           + bgi_ref[...])                  # (T*Bg, 3H) f32

            whh = whh_ref[...]                              # (H, 3H), loaded once
            bhn_b = jnp.broadcast_to(bhn_ref[...], (Bg, H))  # hoisted out of loop

            h = jnp.zeros((Bg, H), jnp.float32)
            # TODO(synk): lax.fori_loop(..., unroll=True) + pl.ds for large T;
            # pltpu.matmul_push_rhs to pin whh across steps for production H.
            for t in range(T):                              # static unrolled recurrence
                gi = gi_ref[t * Bg:(t + 1) * Bg, :]         # (Bg, 3H) scratch load
                gh = jnp.dot(h.astype(mxu_dtype), whh,
                             preferred_element_type=jnp.float32)   # (Bg, 3H)
                # PyTorch GRU gate order [r, z, n]; r/z biases pre-folded on host.
                rz = jax.nn.sigmoid(gi[:, :2 * H] + gh[:, :2 * H])  # fused r/z
                r = rz[:, :H]
                z = rz[:, H:]
                n = jnp.tanh(gi[:, 2 * H:] + r * (gh[:, 2 * H:] + bhn_b))
                h = (1.0 - z) * n + z * h
                seq_ref[t * Bg:(t + 1) * Bg, :] = h         # aligned (Bg % 8 == 0)
            cur = seq_ref[...].astype(mxu_dtype)            # feeds next layer / head

        # Lane-dense head (Opad multiple of 128) + dist transform folded into a
        # single per-column affine: mu cols -> tanh, std cols -> tanh*a + b.
        logits = (jnp.dot(cur, w_out_ref[...],
                          preferred_element_type=jnp.float32)
                  + b_out_ref[...])                         # (T*Bg, Opad)
        out_ref[...] = (jnp.tanh(logits) * a_ref[...]
                        + b_ref[...]).astype(out_ref.dtype)

    return kernel


def fused_policy_forward(x, layer_params, w_out_t, b_out2, a_col, b_col,
                         hidden_features, *, mxu_dtype=jnp.float32,
                         num_groups=None):
    """x: (T, B, F) -> (T, B, Opad) transformed logits via one fused Pallas call."""
    T, B, F = x.shape
    H = hidden_features
    Opad = w_out_t.shape[1]

    if num_groups is None:
        num_groups = 2 if B >= 32 else 1       # v7x: feed both TensorCores
    G = num_groups
    Bg = max(8, _round_up(-(-B // G), 8))      # per-group rows, 8-sublane aligned
    Bp = G * Bg

    if Bp != B:
        x = jnp.pad(x, ((0, 0), (0, Bp - B), (0, 0)))
    # (T, Bp, F) -> (G, T*Bg, F): independent group slabs, time-major inside each.
    xg = (x.reshape(T, G, Bg, F).transpose(1, 0, 2, 3)
           .reshape(G, T * Bg, F).astype(mxu_dtype))

    n_layers = len(layer_params)

    def rep(shape):  # weight replicated across the (parallel) group grid axis
        return pl.BlockSpec(shape, lambda g: (0,) * len(shape))

    flat_args, flat_specs = [], []
    for lp in layer_params:
        for name in ("w_ih_t", "w_hh_t"):
            w = lp[name].astype(mxu_dtype)
            flat_args.append(w)
            flat_specs.append(rep(w.shape))
        for name in ("b_gi", "b_hn"):
            b = lp[name]                       # biases stay f32
            flat_args.append(b)
            flat_specs.append(rep(b.shape))

    tail_args = [w_out_t.astype(mxu_dtype), b_out2, a_col, b_col]
    tail_specs = [rep(a.shape) for a in tail_args]

    in_specs = ([pl.BlockSpec((None, T * Bg, F), lambda g: (g, 0, 0))]
                + flat_specs + tail_specs)
    out_spec = pl.BlockSpec((None, T * Bg, Opad), lambda g: (g, 0, 0))

    # Explicit VMEM budget (v5e scoped default ~16 MiB; v7x physical 64 MiB).
    # TODO(synk): for production layer counts, stream per-layer weights from
    # pl.ANY with manual double-buffered DMAs instead of full residency.
    itm = jnp.dtype(mxu_dtype).itemsize
    est = T * Bg * F * itm + T * Bg * Opad * 4 + T * Bg * 4 * H * 4
    for lp in layer_params:
        est += (lp["w_ih_t"].size + lp["w_hh_t"].size) * itm + 4 * H * 4
    est += H * Opad * itm + 3 * Opad * 4
    vmem_limit = int(min(48 * 2 ** 20, max(32 * 2 ** 20, 4 * est)))

    out = pl.pallas_call(
        _make_fused_kernel(n_layers, T, Bg, H, mxu_dtype),
        grid=(G,),
        out_shape=jax.ShapeDtypeStruct((G, T * Bg, Opad), jnp.float32),
        in_specs=in_specs,
        out_specs=out_spec,
        scratch_shapes=[pltpu.VMEM((T * Bg, H), jnp.float32),
                        pltpu.VMEM((T * Bg, 3 * H), jnp.float32)],
        compiler_params=pltpu.CompilerParams(
            dimension_semantics=("parallel",),
            vmem_limit_bytes=vmem_limit),
    )(xg, *flat_args, *tail_args)

    out = (out.reshape(G, T, Bg, Opad).transpose(1, 0, 2, 3)
              .reshape(T, Bp, Opad))
    return out[:, :B, :]


# ----------------------------------------------------------------------------
# RecurrentPolicy in JAX
# ----------------------------------------------------------------------------
class RecurrentPolicyPallas:
    """GRU(in, hidden, layers) -> Linear(hidden, out) -> mix of DiagNormal."""

    def __init__(self, in_features, out_features, hidden_features, hidden_layers,
                 dist_config, key):
        self.in_features = in_features
        self.out_features = out_features
        self.hidden_features = hidden_features
        self.hidden_layers = hidden_layers
        self.dist_config = dist_config

        # --- deterministic parameter init (PyTorch-style uniform) -----------
        H = hidden_features
        k_rnn = 1.0 / math.sqrt(H)
        params = {"layers": []}
        for layer in range(hidden_layers):
            f_in = in_features if layer == 0 else H
            key, k1, k2, k3, k4 = jax.random.split(key, 5)
            params["layers"].append(dict(
                w_ih=jax.random.uniform(k1, (3 * H, f_in), jnp.float32, -k_rnn, k_rnn),
                w_hh=jax.random.uniform(k2, (3 * H, H), jnp.float32, -k_rnn, k_rnn),
                b_ih=jax.random.uniform(k3, (3 * H,), jnp.float32, -k_rnn, k_rnn),
                b_hh=jax.random.uniform(k4, (3 * H,), jnp.float32, -k_rnn, k_rnn),
            ))
        k_lin = 1.0 / math.sqrt(H)
        key, k1, k2 = jax.random.split(key, 3)
        params["w_out"] = jax.random.uniform(k1, (out_features, H), jnp.float32, -k_lin, k_lin)
        params["b_out"] = jax.random.uniform(k2, (out_features,), jnp.float32, -k_lin, k_lin)
        self.params = params

        # --- kernel-ready (pre-transposed / bias-folded) GRU parameters -----
        self.kernel_layers = []
        for lp in params["layers"]:
            b_ih, b_hh = lp["b_ih"], lp["b_hh"]
            b_gi = jnp.concatenate(
                [b_ih[:2 * H] + b_hh[:2 * H], b_ih[2 * H:]]).reshape(1, 3 * H)
            self.kernel_layers.append(dict(
                w_ih_t=lp["w_ih"].T,                 # (F_in, 3H)
                w_hh_t=lp["w_hh"].T,                 # (H, 3H)
                b_gi=b_gi,                           # (1, 3H) r/z biases folded
                b_hn=b_hh[2 * H:].reshape(1, H),     # (1, H)  stays in n gate
            ))

        # --- lane-dense head: pad output columns to a multiple of 128 -------
        O = out_features
        Opad = _round_up(max(O, 128), 128)
        self.out_pad = Opad
        self.w_out_t = jnp.pad(params["w_out"].T, ((0, 0), (0, Opad - O)))  # (H, Opad)
        self.b_out2 = jnp.pad(params["b_out"], (0, Opad - O)).reshape(1, Opad)

        # --- mu/std column mask folded into one affine: out = tanh*a + b ----
        mask = []
        self.output_sizes = []
        self.dims = []
        for cfg in dist_config:
            assert cfg["type"] == "normal", "only 'normal' sub-dists implemented"
            d = cfg["dim"]
            od = cfg["output_dim"]
            assert od == 2 * d, "conditioned_std normal expects output_dim == 2*dim"
            mask += [1.0] * d + [0.0] * d
            self.output_sizes.append(od)
            self.dims.append(d)
        assert sum(self.output_sizes) == out_features
        mask = jnp.asarray(mask, jnp.float32)
        scale = 0.5 * (MAX_STD - MIN_STD)
        a = mask + (1.0 - mask) * scale                       # mu: 1, std: 0.2495
        b = (1.0 - mask) * (scale + MIN_STD)                  # mu: 0, std: 0.2505
        self.a_col = jnp.pad(a, (0, Opad - O), constant_values=1.0).reshape(1, Opad)
        self.b_col = jnp.pad(b, (0, Opad - O)).reshape(1, Opad)

    def __call__(self, x, adapt_std=None, mxu_dtype=jnp.float32, num_groups=None):
        """x: (T, B, in_features) or (B, in_features). Returns list of (mu, std)."""
        squeezed = False
        if x.ndim == 2:
            x = x[None]                  # mirrors torch unsqueeze(0)
            squeezed = True

        out = fused_policy_forward(x, self.kernel_layers, self.w_out_t,
                                   self.b_out2, self.a_col, self.b_col,
                                   self.hidden_features, mxu_dtype=mxu_dtype,
                                   num_groups=num_groups)
        out = out[..., :self.out_features]
        if squeezed:
            out = out[0]

        # split into per-distribution (mu, std) pairs (glue, plain JAX)
        dists = []
        off = 0
        for d, od in zip(self.dims, self.output_sizes):
            blk = out[..., off:off + od]
            # TODO(synk): the reference 'normal' conditioned_std path ignores
            # adapt_std; std always comes from the logits.
            dists.append((blk[..., :d], blk[..., d:]))
            off += od
        return dists


# ----------------------------------------------------------------------------
# Pure-JAX reference (for correctness sanity check)
# ----------------------------------------------------------------------------
def reference_forward(policy, x):
    params = policy.params
    h_seq = x
    for lp in params["layers"]:
        T, B, _ = h_seq.shape
        H = policy.hidden_features
        w_ih, w_hh, b_ih, b_hh = lp["w_ih"], lp["w_hh"], lp["b_ih"], lp["b_hh"]

        def step(h, xt):
            gi = xt @ w_ih.T + b_ih
            gh = h @ w_hh.T + b_hh
            i_r, i_z, i_n = gi[:, :H], gi[:, H:2 * H], gi[:, 2 * H:]
            h_r, h_z, h_n = gh[:, :H], gh[:, H:2 * H], gh[:, 2 * H:]
            r = jax.nn.sigmoid(i_r + h_r)
            z = jax.nn.sigmoid(i_z + h_z)
            n = jnp.tanh(i_n + r * h_n)
            h_new = (1 - z) * n + z * h
            return h_new, h_new

        h0 = jnp.zeros((B, H), jnp.float32)
        _, h_seq = jax.lax.scan(step, h0, h_seq)

    logits = h_seq @ params["w_out"].T + params["b_out"]
    dists = []
    off = 0
    for d, od in zip(policy.dims, policy.output_sizes):
        blk = logits[..., off:off + od]
        mu = jnp.tanh(blk[..., :d])
        ls = blk[..., d:]
        std = (jnp.tanh(ls) + 1) / 2 * (MAX_STD - MIN_STD) + MIN_STD
        dists.append((mu, std))
        off += od
    return dists


# ----------------------------------------------------------------------------
# main
# ----------------------------------------------------------------------------
if __name__ == "__main__":
    key = jax.random.PRNGKey(0)

    T, B = 8, 2
    in_features = 6
    hidden_features = 32
    hidden_layers = 2
    dist_config = [
        {"type": "normal", "dim": 3, "output_dim": 6, "conditioned_std": True},
        {"type": "normal", "dim": 5, "output_dim": 10, "conditioned_std": True},
    ]
    out_features = sum(c["output_dim"] for c in dist_config)  # 16

    key, k_param, k_x = jax.random.split(key, 3)
    policy = RecurrentPolicyPallas(in_features, out_features, hidden_features,
                                   hidden_layers, dist_config, k_param)

    x = jax.random.normal(k_x, (T, B, in_features), jnp.float32)

    # --- 3-D (sequence) path, f32 MXU: strict check ---
    dists = policy(x)
    dists = jax.tree_util.tree_map(jax.block_until_ready, dists)
    ref = reference_forward(policy, x)
    for (mu_k, std_k), (mu_r, std_r) in zip(dists, ref):
        assert mu_k.shape == mu_r.shape and std_k.shape == std_r.shape
        assert jnp.allclose(mu_k, mu_r, rtol=1e-5, atol=1e-5)
        assert jnp.allclose(std_k, std_r, rtol=1e-5, atol=1e-5)

    # --- 2-D (single-step, fresh state) path ---
    dists1 = policy(x[0])
    dists1 = jax.tree_util.tree_map(jax.block_until_ready, dists1)
    ref1 = reference_forward(policy, x[:1])
    for (mu_k, std_k), (mu_r, std_r) in zip(dists1, ref1):
        assert jnp.allclose(mu_k, mu_r[0], rtol=1e-5, atol=1e-5)
        assert jnp.allclose(std_k, std_r[0], rtol=1e-5, atol=1e-5)

    # --- larger batch: exercises the 2-group parallel grid (both v7x TCs) ---
    key, k_xb = jax.random.split(key)
    xb = jax.random.normal(k_xb, (T, 40, in_features), jnp.float32)
    dists_b = policy(xb)                       # auto num_groups = 2
    dists_b = jax.tree_util.tree_map(jax.block_until_ready, dists_b)
    ref_b = reference_forward(policy, xb)
    for (mu_k, std_k), (mu_r, std_r) in zip(dists_b, ref_b):
        assert jnp.allclose(mu_k, mu_r, rtol=1e-5, atol=1e-5)
        assert jnp.allclose(std_k, std_r, rtol=1e-5, atol=1e-5)

    # --- bf16 MXU path (production mode): loose tolerance sanity check ---
    dists_bf = policy(x, mxu_dtype=jnp.bfloat16)
    dists_bf = jax.tree_util.tree_map(jax.block_until_ready, dists_bf)
    for (mu_k, std_k), (mu_r, std_r) in zip(dists_bf, ref):
        assert jnp.allclose(mu_k, mu_r, rtol=1e-1, atol=1e-1)
        assert jnp.allclose(std_k, std_r, rtol=1e-1, atol=1e-1)

    print("KERNEL_OK")
</pallas_src>

<mosaic_0001>
module attributes {stable_mosaic.version = 11 : i64} {
  func.func @kernel(%arg0: i32, %arg1: memref<1x64x6xf32, #tpu.memory_space<vmem>>, %arg2: memref<6x96xf32, #tpu.memory_space<vmem>>, %arg3: memref<32x96xf32, #tpu.memory_space<vmem>>, %arg4: memref<1x96xf32, #tpu.memory_space<vmem>>, %arg5: memref<1x32xf32, #tpu.memory_space<vmem>>, %arg6: memref<32x96xf32, #tpu.memory_space<vmem>>, %arg7: memref<32x96xf32, #tpu.memory_space<vmem>>, %arg8: memref<1x96xf32, #tpu.memory_space<vmem>>, %arg9: memref<1x32xf32, #tpu.memory_space<vmem>>, %arg10: memref<32x128xf32, #tpu.memory_space<vmem>>, %arg11: memref<1x128xf32, #tpu.memory_space<vmem>>, %arg12: memref<1x128xf32, #tpu.memory_space<vmem>>, %arg13: memref<1x128xf32, #tpu.memory_space<vmem>>, %arg14: memref<1x64x128xf32, #tpu.memory_space<vmem>>, %arg15: memref<64x32xf32, #tpu.memory_space<vmem>>, %arg16: memref<64x96xf32, #tpu.memory_space<vmem>>) attributes {dimension_semantics = [#tpu.dimension_semantics<parallel>], iteration_bounds = array<i64: 1>, scalar_prefetch = 0 : i64, scratch_operands = 2 : i64, tpu.core_type = #tpu.core_type<tc>, window_params = [{transform_indices = @transform_0, window_bounds = array<i64: 1, 64, 6>}, {pipeline_mode = #tpu.pipeline_mode<synchronous>, transform_indices = @transform_1, window_bounds = array<i64: 6, 96>}, {pipeline_mode = #tpu.pipeline_mode<synchronous>, transform_indices = @transform_2, window_bounds = array<i64: 32, 96>}, {pipeline_mode = #tpu.pipeline_mode<synchronous>, transform_indices = @transform_3, window_bounds = array<i64: 1, 96>}, {pipeline_mode = #tpu.pipeline_mode<synchronous>, transform_indices = @transform_4, window_bounds = array<i64: 1, 32>}, {pipeline_mode = #tpu.pipeline_mode<synchronous>, transform_indices = @transform_5, window_bounds = array<i64: 32, 96>}, {pipeline_mode = #tpu.pipeline_mode<synchronous>, transform_indices = @transform_6, window_bounds = array<i64: 32, 96>}, {pipeline_mode = #tpu.pipeline_mode<synchronous>, transform_indices = @transform_7, window_bounds = array<i64: 1, 96>}, {pipeline_mode = #tpu.pipeline_mode<synchronous>, transform_indices = @transform_8, window_bounds = array<i64: 1, 32>}, {pipeline_mode = #tpu.pipeline_mode<synchronous>, transform_indices = @transform_9, window_bounds = array<i64: 32, 128>}, {pipeline_mode = #tpu.pipeline_mode<synchronous>, transform_indices = @transform_10, window_bounds = array<i64: 1, 128>}, {pipeline_mode = #tpu.pipeline_mode<synchronous>, transform_indices = @transform_11, window_bounds = array<i64: 1, 128>}, {pipeline_mode = #tpu.pipeline_mode<synchronous>, transform_indices = @transform_12, window_bounds = array<i64: 1, 128>}, {transform_indices = @transform_13, window_bounds = array<i64: 1, 64, 128>}]} {
    %c0 = arith.constant 0 : index
    %c0_0 = arith.constant 0 : index
    %c0_1 = arith.constant 0 : index
    %0 = vector.load %arg1[%c0, %c0_0, %c0_1] : memref<1x64x6xf32, #tpu.memory_space<vmem>>, vector<1x64x6xf32>
    %1 = vector.shape_cast %0 : vector<1x64x6xf32> to vector<64x6xf32>
    %c0_2 = arith.constant 0 : index
    %c0_3 = arith.constant 0 : index
    %2 = vector.load %arg2[%c0_2, %c0_3] : memref<6x96xf32, #tpu.memory_space<vmem>>, vector<6x96xf32>
    %cst = arith.constant dense<0.000000e+00> : vector<64x96xf32>
    %3 = tpu.matmul %1, %2, %cst {dimension_numbers = #tpu.dot_dimension_numbers<[1], [0], [0], [1], [0, 0, 1, 1], [], []>} : vector<64x6xf32>, vector<6x96xf32>, vector<64x96xf32> -> vector<64x96xf32>
    %c0_4 = arith.constant 0 : index
    %c0_5 = arith.constant 0 : index
    %4 = vector.load %arg4[%c0_4, %c0_5] : memref<1x96xf32, #tpu.memory_space<vmem>>, vector<1x96xf32>
    %5 = vector.broadcast %4 : vector<1x96xf32> to vector<64x96xf32>
    %6 = arith.addf %3, %5 : vector<64x96xf32>
    %c0_6 = arith.constant 0 : index
    %c0_7 = arith.constant 0 : index
    %7 = vector.load %arg16[%c0_6, %c0_7] : memref<64x96xf32, #tpu.memory_space<vmem>>, vector<64x96xf32>
    tpu.vector_store %arg16[%c0_6, %c0_7], %6 {strides = array<i32>} : memref<64x96xf32, #tpu.memory_space<vmem>>, vector<64x96xf32>,
    %c0_8 = arith.constant 0 : index
    %c0_9 = arith.constant 0 : index
    %8 = vector.load %arg3[%c0_8, %c0_9] : memref<32x96xf32, #tpu.memory_space<vmem>>, vector<32x96xf32>
    %c0_10 = arith.constant 0 : index
    %c0_11 = arith.constant 0 : index
    %9 = vector.load %arg5[%c0_10, %c0_11] : memref<1x32xf32, #tpu.memory_space<vmem>>, vector<1x32xf32>
    %10 = vector.shape_cast %9 : vector<1x32xf32> to vector<1x32xf32>
    %11 = vector.broadcast %10 : vector<1x32xf32> to vector<8x32xf32>
    %cst_12 = arith.constant 0.000000e+00 : f32
    %12 = vector.broadcast %cst_12 : f32 to vector<8x32xf32>
    %c0_13 = arith.constant 0 : index
    %c0_14 = arith.constant 0 : index
    %13 = vector.load %arg16[%c0_13, %c0_14] : memref<64x96xf32, #tpu.memory_space<vmem>>, vector<8x96xf32>
    %cst_15 = arith.constant dense<0.000000e+00> : vector<8x96xf32>
    %14 = tpu.matmul %12, %8, %cst_15 {dimension_numbers = #tpu.dot_dimension_numbers<[1], [0], [0], [1], [0, 0, 1, 1], [], []>} : vector<8x32xf32>, vector<32x96xf32>, vector<8x96xf32> -> vector<8x96xf32>
    %15 = vector.extract_strided_slice %13 {offsets = [0, 0], sizes = [8, 64], strides = [1, 1]} : vector<8x96xf32> to vector<8x64xf32>
    %16 = vector.extract_strided_slice %14 {offsets = [0, 0], sizes = [8, 64], strides = [1, 1]} : vector<8x96xf32> to vector<8x64xf32>
    %17 = arith.addf %15, %16 : vector<8x64xf32>
    %18 = arith.negf %17 : vector<8x64xf32>
    %19 = math.exp %18 : vector<8x64xf32>
    %cst_16 = arith.constant 1.000000e+00 : f32
    %20 = vector.broadcast %cst_16 : f32 to vector<8x64xf32>
    %21 = arith.addf %20, %19 : vector<8x64xf32>
    %22 = arith.divf %20, %21 : vector<8x64xf32>
    %23 = vector.extract_strided_slice %22 {offsets = [0, 0], sizes = [8, 32], strides = [1, 1]} : vector<8x64xf32> to vector<8x32xf32>
    %24 = vector.extract_strided_slice %22 {offsets = [0, 32], sizes = [8, 32], strides = [1, 1]} : vector<8x64xf32> to vector<8x32xf32>
    %25 = vector.extract_strided_slice %13 {offsets = [0, 64], sizes = [8, 32], strides = [1, 1]} : vector<8x96xf32> to vector<8x32xf32>
    %26 = vector.extract_strided_slice %14 {offsets = [0, 64], sizes = [8, 32], strides = [1, 1]} : vector<8x96xf32> to vector<8x32xf32>
    %27 = arith.addf %26, %11 : vector<8x32xf32>
    %28 = arith.mulf %23, %27 : vector<8x32xf32>
    %29 = arith.addf %25, %28 : vector<8x32xf32>
    %30 = math.tanh %29 : vector<8x32xf32>
    %cst_17 = arith.constant 1.000000e+00 : f32
    %31 = vector.broadcast %cst_17 : f32 to vector<8x32xf32>
    %32 = arith.subf %31, %24 : vector<8x32xf32>
    %33 = arith.mulf %32, %30 : vector<8x32xf32>
    %34 = arith.mulf %24, %12 : vector<8x32xf32>
    %35 = arith.addf %33, %34 : vector<8x32xf32>
    %c0_18 = arith.constant 0 : index
    %c0_19 = arith.constant 0 : index
    %36 = vector.load %arg15[%c0_18, %c0_19] : memref<64x32xf32, #tpu.memory_space<vmem>>, vector<8x32xf32>
    tpu.vector_store %arg15[%c0_18, %c0_19], %35 {strides = array<i32>} : memref<64x32xf32, #tpu.memory_space<vmem>>, vector<8x32xf32>,
    %c8 = arith.constant 8 : index
    %c0_20 = arith.constant 0 : index
    %37 = vector.load %arg16[%c8, %c0_20] : memref<64x96xf32, #tpu.memory_space<vmem>>, vector<8x96xf32>
    %cst_21 = arith.constant dense<0.000000e+00> : vector<8x96xf32>
    %38 = tpu.matmul %35, %8, %cst_21 {dimension_numbers = #tpu.dot_dimension_numbers<[1], [0], [0], [1], [0, 0, 1, 1], [], []>} : vector<8x32xf32>, vector<32x96xf32>, vector<8x96xf32> -> vector<8x96xf32>
    %39 = vector.extract_strided_slice %37 {offsets = [0, 0], sizes = [8, 64], strides = [1, 1]} : vector<8x96xf32> to vector<8x64xf32>
    %40 = vector.extract_strided_slice %38 {offsets = [0, 0], sizes = [8, 64], strides = [1, 1]} : vector<8x96xf32> to vector<8x64xf32>
    %41 = arith.addf %39, %40 : vector<8x64xf32>
    %42 = arith.negf %41 : vector<8x64xf32>
    %43 = math.exp %42 : vector<8x64xf32>
    %cst_22 = arith.constant 1.000000e+00 : f32
    %44 = vector.broadcast %cst_22 : f32 to vector<8x64xf32>
    %45 = arith.addf %44, %43 : vector<8x64xf32>
    %46 = arith.divf %44, %45 : vector<8x64xf32>
    %47 = vector.extract_strided_slice %46 {offsets = [0, 0], sizes = [8, 32], strides = [1, 1]} : vector<8x64xf32> to vector<8x32xf32>
    %48 = vector.extract_strided_slice %46 {offsets = [0, 32], sizes = [8, 32], strides = [1, 1]} : vector<8x64xf32> to vector<8x32xf32>
    %49 = vector.extract_strided_slice %37 {offsets = [0, 64], sizes = [8, 32], strides = [1, 1]} : vector<8x96xf32> to vector<8x32xf32>
    %50 = vector.extract_strided_slice %38 {offsets = [0, 64], sizes = [8, 32], strides = [1, 1]} : vector<8x96xf32> to vector<8x32xf32>
    %51 = arith.addf %50, %11 : vector<8x32xf32>
    %52 = arith.mulf %47, %51 : vector<8x32xf32>
    %53 = arith.addf %49, %52 : vector<8x32xf32>
    %54 = math.tanh %53 : vector<8x32xf32>
    %cst_23 = arith.constant 1.000000e+00 : f32
    %55 = vector.broadcast %cst_23 : f32 to vector<8x32xf32>
    %56 = arith.subf %55, %48 : vector<8x32xf32>
    %57 = arith.mulf %56, %54 : vector<8x32xf32>
    %58 = arith.mulf %48, %35 : vector<8x32xf32>
    %59 = arith.addf %57, %58 : vector<8x32xf32>
    %c8_24 = arith.constant 8 : index
    %c0_25 = arith.constant 0 : index
    %60 = vector.load %arg15[%c8_24, %c0_25] : memref<64x32xf32, #tpu.memory_space<vmem>>, vector<8x32xf32>
    tpu.vector_store %arg15[%c8_24, %c0_25], %59 {strides = array<i32>} : memref<64x32xf32, #tpu.memory_space<vmem>>, vector<8x32xf32>,
    %c16 = arith.constant 16 : index
    %c0_26 = arith.constant 0 : index
    %61 = vector.load %arg16[%c16, %c0_26] : memref<64x96xf32, #tpu.memory_space<vmem>>, vector<8x96xf32>
    %cst_27 = arith.constant dense<0.000000e+00> : vector<8x96xf32>
    %62 = tpu.matmul %59, %8, %cst_27 {dimension_numbers = #tpu.dot_dimension_numbers<[1], [0], [0], [1], [0, 0, 1, 1], [], []>} : vector<8x32xf32>, vector<32x96xf32>, vector<8x96xf32> -> vector<8x96xf32>
    %63 = vector.extract_strided_slice %61 {offsets = [0, 0], sizes = [8, 64], strides = [1, 1]} : vector<8x96xf32> to vector<8x64xf32>
    %64 = vector.extract_strided_slice %62 {offsets = [0, 0], sizes = [8, 64], strides = [1, 1]} : vector<8x96xf32> to vector<8x64xf32>
    %65 = arith.addf %63, %64 : vector<8x64xf32>
    %66 = arith.negf %65 : vector<8x64xf32>
    %67 = math.exp %66 : vector<8x64xf32>
    %cst_28 = arith.constant 1.000000e+00 : f32
    %68 = vector.broadcast %cst_28 : f32 to vector<8x64xf32>
    %69 = arith.addf %68, %67 : vector<8x64xf32>
    %70 = arith.divf %68, %69 : vector<8x64xf32>
    %71 = vector.extract_strided_slice %70 {offsets = [0, 0], sizes = [8, 32], strides = [1, 1]} : vector<8x64xf32> to vector<8x32xf32>
    %72 = vector.extract_strided_slice %70 {offsets = [0, 32], sizes = [8, 32], strides = [1, 1]} : vector<8x64xf32> to vector<8x32xf32>
    %73 = vector.extract_strided_slice %61 {offsets = [0, 64], sizes = [8, 32], strides = [1, 1]} : vector<8x96xf32> to vector<8x32xf32>
    %74 = vector.extract_strided_slice %62 {offsets = [0, 64], sizes = [8, 32], strides = [1, 1]} : vector<8x96xf32> to vector<8x32xf32>
    %75 = arith.addf %74, %11 : vector<8x32xf32>
    %76 = arith.mulf %71, %75 : vector<8x32xf32>
    %77 = arith.addf %73, %76 : vector<8x32xf32>
    %78 = math.tanh %77 : vector<8x32xf32>
    %cst_29 = arith.constant 1.000000e+00 : f32
    %79 = vector.broadcast %cst_29 : f32 to vector<8x32xf32>
    %80 = arith.subf %79, %72 : vector<8x32xf32>
    %81 = arith.mulf %80, %78 : vector<8x32xf32>
    %82 = arith.mulf %72, %59 : vector<8x32xf32>
    %83 = arith.addf %81, %82 : vector<8x32xf32>
    %c16_30 = arith.constant 16 : index
    %c0_31 = arith.constant 0 : index
    %84 = vector.load %arg15[%c16_30, %c0_31] : memref<64x32xf32, #tpu.memory_space<vmem>>, vector<8x32xf32>
    tpu.vector_store %arg15[%c16_30, %c0_31], %83 {strides = array<i32>} : memref<64x32xf32, #tpu.memory_space<vmem>>, vector<8x32xf32>,
    %c24 = arith.constant 24 : index
    %c0_32 = arith.constant 0 : index
    %85 = vector.load %arg16[%c24, %c0_32] : memref<64x96xf32, #tpu.memory_space<vmem>>, vector<8x96xf32>
    %cst_33 = arith.constant dense<0.000000e+00> : vector<8x96xf32>
    %86 = tpu.matmul %83, %8, %cst_33 {dimension_numbers = #tpu.dot_dimension_numbers<[1], [0], [0], [1], [0, 0, 1, 1], [], []>} : vector<8x32xf32>, vector<32x96xf32>, vector<8x96xf32> -> vector<8x96xf32>
    %87 = vector.extract_strided_slice %85 {offsets = [0, 0], sizes = [8, 64], strides = [1, 1]} : vector<8x96xf32> to vector<8x64xf32>
    %88 = vector.extract_strided_slice %86 {offsets = [0, 0], sizes = [8, 64], strides = [1, 1]} : vector<8x96xf32> to vector<8x64xf32>
    %89 = arith.addf %87, %88 : vector<8x64xf32>
    %90 = arith.negf %89 : vector<8x64xf32>
    %91 = math.exp %90 : vector<8x64xf32>
    %cst_34 = arith.constant 1.000000e+00 : f32
    %92 = vector.broadcast %cst_34 : f32 to vector<8x64xf32>
    %93 = arith.addf %92, %91 : vector<8x64xf32>
    %94 = arith.divf %92, %93 : vector<8x64xf32>
    %95 = vector.extract_strided_slice %94 {offsets = [0, 0], sizes = [8, 32], strides = [1, 1]} : vector<8x64xf32> to vector<8x32xf32>
    %96 = vector.extract_strided_slice %94 {offsets = [0, 32], sizes = [8, 32], strides = [1, 1]} : vector<8x64xf32> to vector<8x32xf32>
    %97 = vector.extract_strided_slice %85 {offsets = [0, 64], sizes = [8, 32], strides = [1, 1]} : vector<8x96xf32> to vector<8x32xf32>
    %98 = vector.extract_strided_slice %86 {offsets = [0, 64], sizes = [8, 32], strides = [1, 1]} : vector<8x96xf32> to vector<8x32xf32>
    %99 = arith.addf %98, %11 : vector<8x32xf32>
    %100 = arith.mulf %95, %99 : vector<8x32xf32>
    %101 = arith.addf %97, %100 : vector<8x32xf32>
    %102 = math.tanh %101 : vector<8x32xf32>
    %cst_35 = arith.constant 1.000000e+00 : f32
    %103 = vector.broadcast %cst_35 : f32 to vector<8x32xf32>
    %104 = arith.subf %103, %96 : vector<8x32xf32>
    %105 = arith.mulf %104, %102 : vector<8x32xf32>
    %106 = arith.mulf %96, %83 : vector<8x32xf32>
    %107 = arith.addf %105, %106 : vector<8x32xf32>
    %c24_36 = arith.constant 24 : index
    %c0_37 = arith.constant 0 : index
    %108 = vector.load %arg15[%c24_36, %c0_37] : memref<64x32xf32, #tpu.memory_space<vmem>>, vector<8x32xf32>
    tpu.vector_store %arg15[%c24_36, %c0_37], %107 {strides = array<i32>} : memref<64x32xf32, #tpu.memory_space<vmem>>, vector<8x32xf32>,
    %c32 = arith.constant 32 : index
    %c0_38 = arith.constant 0 : index
    %109 = vector.load %arg16[%c32, %c0_38] : memref<64x96xf32, #tpu.memory_space<vmem>>, vector<8x96xf32>
    %cst_39 = arith.constant dense<0.000000e+00> : vector<8x96xf32>
    %110 = tpu.matmul %107, %8, %cst_39 {dimension_numbers = #tpu.dot_dimension_numbers<[1], [0], [0], [1], [0, 0, 1, 1], [], []>} : vector<8x32xf32>, vector<32x96xf32>, vector<8x96xf32> -> vector<8x96xf32>
    %111 = vector.extract_strided_slice %109 {offsets = [0, 0], sizes = [8, 64], strides = [1, 1]} : vector<8x96xf32> to vector<8x64xf32>
    %112 = vector.extract_strided_slice %110 {offsets = [0, 0], sizes = [8, 64], strides = [1, 1]} : vector<8x96xf32> to vector<8x64xf32>
    %113 = arith.addf %111, %112 : vector<8x64xf32>
    %114 = arith.negf %113 : vector<8x64xf32>
    %115 = math.exp %114 : vector<8x64xf32>
    %cst_40 = arith.constant 1.000000e+00 : f32
    %116 = vector.broadcast %cst_40 : f32 to vector<8x64xf32>
    %117 = arith.addf %116, %115 : vector<8x64xf32>
    %118 = arith.divf %116, %117 : vector<8x64xf32>
    %119 = vector.extract_strided_slice %118 {offsets = [0, 0], sizes = [8, 32], strides = [1, 1]} : vector<8x64xf32> to vector<8x32xf32>
    %120 = vector.extract_strided_slice %118 {offsets = [0, 32], sizes = [8, 32], strides = [1, 1]} : vector<8x64xf32> to vector<8x32xf32>
    %121 = vector.extract_strided_slice %109 {offsets = [0, 64], sizes = [8, 32], strides = [1, 1]} : vector<8x96xf32> to vector<8x32xf32>
    %122 = vector.extract_strided_slice %110 {offsets = [0, 64], sizes = [8, 32], strides = [1, 1]} : vector<8x96xf32> to vector<8x32xf32>
    %123 = arith.addf %122, %11 : vector<8x32xf32>
    %124 = arith.mulf %119, %123 : vector<8x32xf32>
    %125 = arith.addf %121, %124 : vector<8x32xf32>
    %126 = math.tanh %125 : vector<8x32xf32>
    %cst_41 = arith.constant 1.000000e+00 : f32
    %127 = vector.broadcast %cst_41 : f32 to vector<8x32xf32>
    %128 = arith.subf %127, %120 : vector<8x32xf32>
    %129 = arith.mulf %128, %126 : vector<8x32xf32>
    %130 = arith.mulf %120, %107 : vector<8x32xf32>
    %131 = arith.addf %129, %130 : vector<8x32xf32>
    %c32_42 = arith.constant 32 : index
    %c0_43 = arith.constant 0 : index
    %132 = vector.load %arg15[%c32_42, %c0_43] : memref<64x32xf32, #tpu.memory_space<vmem>>, vector<8x32xf32>
    tpu.vector_store %arg15[%c32_42, %c0_43], %131 {strides = array<i32>} : memref<64x32xf32, #tpu.memory_space<vmem>>, vector<8x32xf32>,
    %c40 = arith.constant 40 : index
    %c0_44 = arith.constant 0 : index
    %133 = vector.load %arg16[%c40, %c0_44] : memref<64x96xf32, #tpu.memory_space<vmem>>, vector<8x96xf32>
    %cst_45 = arith.constant dense<0.000000e+00> : vector<8x96xf32>
    %134 = tpu.matmul %131, %8, %cst_45 {dimension_numbers = #tpu.dot_dimension_numbers<[1], [0], [0], [1], [0, 0, 1, 1], [], []>} : vector<8x32xf32>, vector<32x96xf32>, vector<8x96xf32> -> vector<8x96xf32>
    %135 = vector.extract_strided_slice %133 {offsets = [0, 0], sizes = [8, 64], strides = [1, 1]} : vector<8x96xf32> to vector<8x64xf32>
    %136 = vector.extract_strided_slice %134 {offsets = [0, 0], sizes = [8, 64], strides = [1, 1]} : vector<8x96xf32> to vector<8x64xf32>
    %137 = arith.addf %135, %136 : vector<8x64xf32>
    %138 = arith.negf %137 : vector<8x64xf32>
    %139 = math.exp %138 : vector<8x64xf32>
    %cst_46 = arith.constant 1.000000e+00 : f32
    %140 = vector.broadcast %cst_46 : f32 to vector<8x64xf32>
    %141 = arith.addf %140, %139 : vector<8x64xf32>
    %142 = arith.divf %140, %141 : vector<8x64xf32>
    %143 = vector.extract_strided_slice %142 {offsets = [0, 0], sizes = [8, 32], strides = [1, 1]} : vector<8x64xf32> to vector<8x32xf32>
    %144 = vector.extract_strided_slice %142 {offsets = [0, 32], sizes = [8, 32], strides = [1, 1]} : vector<8x64xf32> to vector<8x32xf32>
    %145 = vector.extract_strided_slice %133 {offsets = [0, 64], sizes = [8, 32], strides = [1, 1]} : vector<8x96xf32> to vector<8x32xf32>
    %146 = vector.extract_strided_slice %134 {offsets = [0, 64], sizes = [8, 32], strides = [1, 1]} : vector<8x96xf32> to vector<8x32xf32>
    %147 = arith.addf %146, %11 : vector<8x32xf32>
    %148 = arith.mulf %143, %147 : vector<8x32xf32>
    %149 = arith.addf %145, %148 : vector<8x32xf32>
    %150 = math.tanh %149 : vector<8x32xf32>
    %cst_47 = arith.constant 1.000000e+00 : f32
    %151 = vector.broadcast %cst_47 : f32 to vector<8x32xf32>
    %152 = arith.subf %151, %144 : vector<8x32xf32>
    %153 = arith.mulf %152, %150 : vector<8x32xf32>
    %154 = arith.mulf %144, %131 : vector<8x32xf32>
    %155 = arith.addf %153, %154 : vector<8x32xf32>
    %c40_48 = arith.constant 40 : index
    %c0_49 = arith.constant 0 : index
    %156 = vector.load %arg15[%c40_48, %c0_49] : memref<64x32xf32, #tpu.memory_space<vmem>>, vector<8x32xf32>
    tpu.vector_store %arg15[%c40_48, %c0_49], %155 {strides = array<i32>} : memref<64x32xf32, #tpu.memory_space<vmem>>, vector<8x32xf32>,
    %c48 = arith.constant 48 : index
    %c0_50 = arith.constant 0 : index
    %157 = vector.load %arg16[%c48, %c0_50] : memref<64x96xf32, #tpu.memory_space<vmem>>, vector<8x96xf32>
    %cst_51 = arith.constant dense<0.000000e+00> : vector<8x96xf32>
    %158 = tpu.matmul %155, %8, %cst_51 {dimension_numbers = #tpu.dot_dimension_numbers<[1], [0], [0], [1], [0, 0, 1, 1], [], []>} : vector<8x32xf32>, vector<32x96xf32>, vector<8x96xf32> -> vector<8x96xf32>
    %159 = vector.extract_strided_slice %157 {offsets = [0, 0], sizes = [8, 64], strides = [1, 1]} : vector<8x96xf32> to vector<8x64xf32>
    %160 = vector.extract_strided_slice %158 {offsets = [0, 0], sizes = [8, 64], strides = [1, 1]} : vector<8x96xf32> to vector<8x64xf32>
    %161 = arith.addf %159, %160 : vector<8x64xf32>
    %162 = arith.negf %161 : vector<8x64xf32>
    %163 = math.exp %162 : vector<8x64xf32>
    %cst_52 = arith.constant 1.000000e+00 : f32
    %164 = vector.broadcast %cst_52 : f32 to vector<8x64xf32>
    %165 = arith.addf %164, %163 : vector<8x64xf32>
    %166 = arith.divf %164, %165 : vector<8x64xf32>
    %167 = vector.extract_strided_slice %166 {offsets = [0, 0], sizes = [8, 32], strides = [1, 1]} : vector<8x64xf32> to vector<8x32xf32>
    %168 = vector.extract_strided_slice %166 {offsets = [0, 32], sizes = [8, 32], strides = [1, 1]} : vector<8x64xf32> to vector<8x32xf32>
    %169 = vector.extract_strided_slice %157 {offsets = [0, 64], sizes = [8, 32], strides = [1, 1]} : vector<8x96xf32> to vector<8x32xf32>
    %170 = vector.extract_strided_slice %158 {offsets = [0, 64], sizes = [8, 32], strides = [1, 1]} : vector<8x96xf32> to vector<8x32xf32>
    %171 = arith.addf %170, %11 : vector<8x32xf32>
    %172 = arith.mulf %167, %171 : vector<8x32xf32>
    %173 = arith.addf %169, %172 : vector<8x32xf32>
    %174 = math.tanh %173 : vector<8x32xf32>
    %cst_53 = arith.constant 1.000000e+00 : f32
    %175 = vector.broadcast %cst_53 : f32 to vector<8x32xf32>
    %176 = arith.subf %175, %168 : vector<8x32xf32>
    %177 = arith.mulf %176, %174 : vector<8x32xf32>
    %178 = arith.mulf %168, %155 : vector<8x32xf32>
    %179 = arith.addf %177, %178 : vector<8x32xf32>
    %c48_54 = arith.constant 48 : index
    %c0_55 = arith.constant 0 : index
    %180 = vector.load %arg15[%c48_54, %c0_55] : memref<64x32xf32, #tpu.memory_space<vmem>>, vector<8x32xf32>
    tpu.vector_store %arg15[%c48_54, %c0_55], %179 {strides = array<i32>} : memref<64x32xf32, #tpu.memory_space<vmem>>, vector<8x32xf32>,
    %c56 = arith.constant 56 : index
    %c0_56 = arith.constant 0 : index
    %181 = vector.load %arg16[%c56, %c0_56] : memref<64x96xf32, #tpu.memory_space<vmem>>, vector<8x96xf32>
    %cst_57 = arith.constant dense<0.000000e+00> : vector<8x96xf32>
    %182 = tpu.matmul %179, %8, %cst_57 {dimension_numbers = #tpu.dot_dimension_numbers<[1], [0], [0], [1], [0, 0, 1, 1], [], []>} : vector<8x32xf32>, vector<32x96xf32>, vector<8x96xf32> -> vector<8x96xf32>
    %183 = vector.extract_strided_slice %181 {offsets = [0, 0], sizes = [8, 64], strides = [1, 1]} : vector<8x96xf32> to vector<8x64xf32>
    %184 = vector.extract_strided_slice %182 {offsets = [0, 0], sizes = [8, 64], strides = [1, 1]} : vector<8x96xf32> to vector<8x64xf32>
    %185 = arith.addf %183, %184 : vector<8x64xf32>
    %186 = arith.negf %185 : vector<8x64xf32>
    %187 = math.exp %186 : vector<8x64xf32>
    %cst_58 = arith.constant 1.000000e+00 : f32
    %188 = vector.broadcast %cst_58 : f32 to vector<8x64xf32>
    %189 = arith.addf %188, %187 : vector<8x64xf32>
    %190 = arith.divf %188, %189 : vector<8x64xf32>
    %191 = vector.extract_strided_slice %190 {offsets = [0, 0], sizes = [8, 32], strides = [1, 1]} : vector<8x64xf32> to vector<8x32xf32>
    %192 = vector.extract_strided_slice %190 {offsets = [0, 32], sizes = [8, 32], strides = [1, 1]} : vector<8x64xf32> to vector<8x32xf32>
    %193 = vector.extract_strided_slice %181 {offsets = [0, 64], sizes = [8, 32], strides = [1, 1]} : vector<8x96xf32> to vector<8x32xf32>
    %194 = vector.extract_strided_slice %182 {offsets = [0, 64], sizes = [8, 32], strides = [1, 1]} : vector<8x96xf32> to vector<8x32xf32>
    %195 = arith.addf %194, %11 : vector<8x32xf32>
    %196 = arith.mulf %191, %195 : vector<8x32xf32>
    %197 = arith.addf %193, %196 : vector<8x32xf32>
    %198 = math.tanh %197 : vector<8x32xf32>
    %cst_59 = arith.constant 1.000000e+00 : f32
    %199 = vector.broadcast %cst_59 : f32 to vector<8x32xf32>
    %200 = arith.subf %199, %192 : vector<8x32xf32>
    %201 = arith.mulf %200, %198 : vector<8x32xf32>
    %202 = arith.mulf %192, %179 : vector<8x32xf32>
    %203 = arith.addf %201, %202 : vector<8x32xf32>
    %c56_60 = arith.constant 56 : index
    %c0_61 = arith.constant 0 : index
    %204 = vector.load %arg15[%c56_60, %c0_61] : memref<64x32xf32, #tpu.memory_space<vmem>>, vector<8x32xf32>
    tpu.vector_store %arg15[%c56_60, %c0_61], %203 {strides = array<i32>} : memref<64x32xf32, #tpu.memory_space<vmem>>, vector<8x32xf32>,
    %c0_62 = arith.constant 0 : index
    %c0_63 = arith.constant 0 : index
    %205 = vector.load %arg15[%c0_62, %c0_63] : memref<64x32xf32, #tpu.memory_space<vmem>>, vector<64x32xf32>
    %c0_64 = arith.constant 0 : index
    %c0_65 = arith.constant 0 : index
    %206 = vector.load %arg6[%c0_64, %c0_65] : memref<32x96xf32, #tpu.memory_space<vmem>>, vector<32x96xf32>
    %cst_66 = arith.constant dense<0.000000e+00> : vector<64x96xf32>
    %207 = tpu.matmul %205, %206, %cst_66 {dimension_numbers = #tpu.dot_dimension_numbers<[1], [0], [0], [1], [0, 0, 1, 1], [], []>} : vector<64x32xf32>, vector<32x96xf32>, vector<64x96xf32> -> vector<64x96xf32>
    %c0_67 = arith.constant 0 : index
    %c0_68 = arith.constant 0 : index
    %208 = vector.load %arg8[%c0_67, %c0_68] : memref<1x96xf32, #tpu.memory_space<vmem>>, vector<1x96xf32>
    %209 = vector.broadcast %208 : vector<1x96xf32> to vector<64x96xf32>
    %210 = arith.addf %207, %209 : vector<64x96xf32>
    %c0_69 = arith.constant 0 : index
    %c0_70 = arith.constant 0 : index
    %211 = vector.load %arg16[%c0_69, %c0_70] : memref<64x96xf32, #tpu.memory_space<vmem>>, vector<64x96xf32>
    tpu.vector_store %arg16[%c0_69, %c0_70], %210 {strides = array<i32>} : memref<64x96xf32, #tpu.memory_space<vmem>>, vector<64x96xf32>,
    %c0_71 = arith.constant 0 : index
    %c0_72 = arith.constant 0 : index
    %212 = vector.load %arg7[%c0_71, %c0_72] : memref<32x96xf32, #tpu.memory_space<vmem>>, vector<32x96xf32>
    %c0_73 = arith.constant 0 : index
    %c0_74 = arith.constant 0 : index
    %213 = vector.load %arg9[%c0_73, %c0_74] : memref<1x32xf32, #tpu.memory_space<vmem>>, vector<1x32xf32>
    %214 = vector.shape_cast %213 : vector<1x32xf32> to vector<1x32xf32>
    %215 = vector.broadcast %214 : vector<1x32xf32> to vector<8x32xf32>
    %cst_75 = arith.constant 0.000000e+00 : f32
    %216 = vector.broadcast %cst_75 : f32 to vector<8x32xf32>
    %c0_76 = arith.constant 0 : index
    %c0_77 = arith.constant 0 : index
    %217 = vector.load %arg16[%c0_76, %c0_77] : memref<64x96xf32, #tpu.memory_space<vmem>>, vector<8x96xf32>
    %cst_78 = arith.constant dense<0.000000e+00> : vector<8x96xf32>
    %218 = tpu.matmul %216, %212, %cst_78 {dimension_numbers = #tpu.dot_dimension_numbers<[1], [0], [0], [1], [0, 0, 1, 1], [], []>} : vector<8x32xf32>, vector<32x96xf32>, vector<8x96xf32> -> vector<8x96xf32>
    %219 = vector.extract_strided_slice %217 {offsets = [0, 0], sizes = [8, 64], strides = [1, 1]} : vector<8x96xf32> to vector<8x64xf32>
    %220 = vector.extract_strided_slice %218 {offsets = [0, 0], sizes = [8, 64], strides = [1, 1]} : vector<8x96xf32> to vector<8x64xf32>
    %221 = arith.addf %219, %220 : vector<8x64xf32>
    %222 = arith.negf %221 : vector<8x64xf32>
    %223 = math.exp %222 : vector<8x64xf32>
    %cst_79 = arith.constant 1.000000e+00 : f32
    %224 = vector.broadcast %cst_79 : f32 to vector<8x64xf32>
    %225 = arith.addf %224, %223 : vector<8x64xf32>
    %226 = arith.divf %224, %225 : vector<8x64xf32>
    %227 = vector.extract_strided_slice %226 {offsets = [0, 0], sizes = [8, 32], strides = [1, 1]} : vector<8x64xf32> to vector<8x32xf32>
    %228 = vector.extract_strided_slice %226 {offsets = [0, 32], sizes = [8, 32], strides = [1, 1]} : vector<8x64xf32> to vector<8x32xf32>
    %229 = vector.extract_strided_slice %217 {offsets = [0, 64], sizes = [8, 32], strides = [1, 1]} : vector<8x96xf32> to vector<8x32xf32>
    %230 = vector.extract_strided_slice %218 {offsets = [0, 64], sizes = [8, 32], strides = [1, 1]} : vector<8x96xf32> to vector<8x32xf32>
    %231 = arith.addf %230, %215 : vector<8x32xf32>
    %232 = arith.mulf %227, %231 : vector<8x32xf32>
    %233 = arith.addf %229, %232 : vector<8x32xf32>
    %234 = math.tanh %233 : vector<8x32xf32>
    %cst_80 = arith.constant 1.000000e+00 : f32
    %235 = vector.broadcast %cst_80 : f32 to vector<8x32xf32>
    %236 = arith.subf %235, %228 : vector<8x32xf32>
    %237 = arith.mulf %236, %234 : vector<8x32xf32>
    %238 = arith.mulf %228, %216 : vector<8x32xf32>
    %239 = arith.addf %237, %238 : vector<8x32xf32>
    %c0_81 = arith.constant 0 : index
    %c0_82 = arith.constant 0 : index
    %240 = vector.load %arg15[%c0_81, %c0_82] : memref<64x32xf32, #tpu.memory_space<vmem>>, vector<8x32xf32>
    tpu.vector_store %arg15[%c0_81, %c0_82], %239 {strides = array<i32>} : memref<64x32xf32, #tpu.memory_space<vmem>>, vector<8x32xf32>,
    %c8_83 = arith.constant 8 : index
    %c0_84 = arith.constant 0 : index
    %241 = vector.load %arg16[%c8_83, %c0_84] : memref<64x96xf32, #tpu.memory_space<vmem>>, vector<8x96xf32>
    %cst_85 = arith.constant dense<0.000000e+00> : vector<8x96xf32>
    %242 = tpu.matmul %239, %212, %cst_85 {dimension_numbers = #tpu.dot_dimension_numbers<[1], [0], [0], [1], [0, 0, 1, 1], [], []>} : vector<8x32xf32>, vector<32x96xf32>, vector<8x96xf32> -> vector<8x96xf32>
    %243 = vector.extract_strided_slice %241 {offsets = [0, 0], sizes = [8, 64], strides = [1, 1]} : vector<8x96xf32> to vector<8x64xf32>
    %244 = vector.extract_strided_slice %242 {offsets = [0, 0], sizes = [8, 64], strides = [1, 1]} : vector<8x96xf32> to vector<8x64xf32>
    %245 = arith.addf %243, %244 : vector<8x64xf32>
    %246 = arith.negf %245 : vector<8x64xf32>
    %247 = math.exp %246 : vector<8x64xf32>
    %cst_86 = arith.constant 1.000000e+00 : f32
    %248 = vector.broadcast %cst_86 : f32 to vector<8x64xf32>
    %249 = arith.addf %248, %247 : vector<8x64xf32>
    %250 = arith.divf %248, %249 : vector<8x64xf32>
    %251 = vector.extract_strided_slice %250 {offsets = [0, 0], sizes = [8, 32], strides = [1, 1]} : vector<8x64xf32> to vector<8x32xf32>
    %252 = vector.extract_strided_slice %250 {offsets = [0, 32], sizes = [8, 32], strides = [1, 1]} : vector<8x64xf32> to vector<8x32xf32>
    %253 = vector.extract_strided_slice %241 {offsets = [0, 64], sizes = [8, 32], strides = [1, 1]} : vector<8x96xf32> to vector<8x32xf32>
    %254 = vector.extract_strided_slice %242 {offsets = [0, 64], sizes = [8, 32], strides = [1, 1]} : vector<8x96xf32> to vector<8x32xf32>
    %255 = arith.addf %254, %215 : vector<8x32xf32>
    %256 = arith.mulf %251, %255 : vector<8x32xf32>
    %257 = arith.addf %253, %256 : vector<8x32xf32>
    %258 = math.tanh %257 : vector<8x32xf32>
    %cst_87 = arith.constant 1.000000e+00 : f32
    %259 = vector.broadcast %cst_87 : f32 to vector<8x32xf32>
    %260 = arith.subf %259, %252 : vector<8x32xf32>
    %261 = arith.mulf %260, %258 : vector<8x32xf32>
    %262 = arith.mulf %252, %239 : vector<8x32xf32>
    %263 = arith.addf %261, %262 : vector<8x32xf32>
    %c8_88 = arith.constant 8 : index
    %c0_89 = arith.constant 0 : index
    %264 = vector.load %arg15[%c8_88, %c0_89] : memref<64x32xf32, #tpu.memory_space<vmem>>, vector<8x32xf32>
    tpu.vector_store %arg15[%c8_88, %c0_89], %263 {strides = array<i32>} : memref<64x32xf32, #tpu.memory_space<vmem>>, vector<8x32xf32>,
    %c16_90 = arith.constant 16 : index
    %c0_91 = arith.constant 0 : index
    %265 = vector.load %arg16[%c16_90, %c0_91] : memref<64x96xf32, #tpu.memory_space<vmem>>, vector<8x96xf32>
    %cst_92 = arith.constant dense<0.000000e+00> : vector<8x96xf32>
    %266 = tpu.matmul %263, %212, %cst_92 {dimension_numbers = #tpu.dot_dimension_numbers<[1], [0], [0], [1], [0, 0, 1, 1], [], []>} : vector<8x32xf32>, vector<32x96xf32>, vector<8x96xf32> -> vector<8x96xf32>
    %267 = vector.extract_strided_slice %265 {offsets = [0, 0], sizes = [8, 64], strides = [1, 1]} : vector<8x96xf32> to vector<8x64xf32>
    %268 = vector.extract_strided_slice %266 {offsets = [0, 0], sizes = [8, 64], strides = [1, 1]} : vector<8x96xf32> to vector<8x64xf32>
    %269 = arith.addf %267, %268 : vector<8x64xf32>
    %270 = arith.negf %269 : vector<8x64xf32>
    %271 = math.exp %270 : vector<8x64xf32>
    %cst_93 = arith.constant 1.000000e+00 : f32
    %272 = vector.broadcast %cst_93 : f32 to vector<8x64xf32>
    %273 = arith.addf %272, %271 : vector<8x64xf32>
    %274 = arith.divf %272, %273 : vector<8x64xf32>
    %275 = vector.extract_strided_slice %274 {offsets = [0, 0], sizes = [8, 32], strides = [1, 1]} : vector<8x64xf32> to vector<8x32xf32>
    %276 = vector.extract_strided_slice %274 {offsets = [0, 32], sizes = [8, 32], strides = [1, 1]} : vector<8x64xf32> to vector<8x32xf32>
    %277 = vector.extract_strided_slice %265 {offsets = [0, 64], sizes = [8, 32], strides = [1, 1]} : vector<8x96xf32> to vector<8x32xf32>
    %278 = vector.extract_strided_slice %266 {offsets = [0, 64], sizes = [8, 32], strides = [1, 1]} : vector<8x96xf32> to vector<8x32xf32>
    %279 = arith.addf %278, %215 : vector<8x32xf32>
    %280 = arith.mulf %275, %279 : vector<8x32xf32>
    %281 = arith.addf %277, %280 : vector<8x32xf32>
    %282 = math.tanh %281 : vector<8x32xf32>
    %cst_94 = arith.constant 1.000000e+00 : f32
    %283 = vector.broadcast %cst_94 : f32 to vector<8x32xf32>
    %284 = arith.subf %283, %276 : vector<8x32xf32>
    %285 = arith.mulf %284, %282 : vector<8x32xf32>
    %286 = arith.mulf %276, %263 : vector<8x32xf32>
    %287 = arith.addf %285, %286 : vector<8x32xf32>
    %c16_95 = arith.constant 16 : index
    %c0_96 = arith.constant 0 : index
    %288 = vector.load %arg15[%c16_95, %c0_96] : memref<64x32xf32, #tpu.memory_space<vmem>>, vector<8x32xf32>
    tpu.vector_store %arg15[%c16_95, %c0_96], %287 {strides = array<i32>} : memref<64x32xf32, #tpu.memory_space<vmem>>, vector<8x32xf32>,
    %c24_97 = arith.constant 24 : index
    %c0_98 = arith.constant 0 : index
    %289 = vector.load %arg16[%c24_97, %c0_98] : memref<64x96xf32, #tpu.memory_space<vmem>>, vector<8x96xf32>
    %cst_99 = arith.constant dense<0.000000e+00> : vector<8x96xf32>
    %290 = tpu.matmul %287, %212, %cst_99 {dimension_numbers = #tpu.dot_dimension_numbers<[1], [0], [0], [1], [0, 0, 1, 1], [], []>} : vector<8x32xf32>, vector<32x96xf32>, vector<8x96xf32> -> vector<8x96xf32>
    %291 = vector.extract_strided_slice %289 {offsets = [0, 0], sizes = [8, 64], strides = [1, 1]} : vector<8x96xf32> to vector<8x64xf32>
    %292 = vector.extract_strided_slice %290 {offsets = [0, 0], sizes = [8, 64], strides = [1, 1]} : vector<8x96xf32> to vector<8x64xf32>
    %293 = arith.addf %291, %292 : vector<8x64xf32>
    %294 = arith.negf %293 : vector<8x64xf32>
    %295 = math.exp %294 : vector<8x64xf32>
    %cst_100 = arith.constant 1.000000e+00 : f32
    %296 = vector.broadcast %cst_100 : f32 to vector<8x64xf32>
    %297 = arith.addf %296, %295 : vector<8x64xf32>
    %298 = arith.divf %296, %297 : vector<8x64xf32>
    %299 = vector.extract_strided_slice %298 {offsets = [0, 0], sizes = [8, 32], strides = [1, 1]} : vector<8x64xf32> to vector<8x32xf32>
    %300 = vector.extract_strided_slice %298 {offsets = [0, 32], sizes = [8, 32], strides = [1, 1]} : vector<8x64xf32> to vector<8x32xf32>
    %301 = vector.extract_strided_slice %289 {offsets = [0, 64], sizes = [8, 32], strides = [1, 1]} : vector<8x96xf32> to vector<8x32xf32>
    %302 = vector.extract_strided_slice %290 {offsets = [0, 64], sizes = [8, 32], strides = [1, 1]} : vector<8x96xf32> to vector<8x32xf32>
    %303 = arith.addf %302, %215 : vector<8x32xf32>
    %304 = arith.mulf %299, %303 : vector<8x32xf32>
    %305 = arith.addf %301, %304 : vector<8x32xf32>
    %306 = math.tanh %305 : vector<8x32xf32>
    %cst_101 = arith.constant 1.000000e+00 : f32
    %307 = vector.broadcast %cst_101 : f32 to vector<8x32xf32>
    %308 = arith.subf %307, %300 : vector<8x32xf32>
    %309 = arith.mulf %308, %306 : vector<8x32xf32>
    %310 = arith.mulf %300, %287 : vector<8x32xf32>
    %311 = arith.addf %309, %310 : vector<8x32xf32>
    %c24_102 = arith.constant 24 : index
    %c0_103 = arith.constant 0 : index
    %312 = vector.load %arg15[%c24_102, %c0_103] : memref<64x32xf32, #tpu.memory_space<vmem>>, vector<8x32xf32>
    tpu.vector_store %arg15[%c24_102, %c0_103], %311 {strides = array<i32>} : memref<64x32xf32, #tpu.memory_space<vmem>>, vector<8x32xf32>,
    %c32_104 = arith.constant 32 : index
    %c0_105 = arith.constant 0 : index
    %313 = vector.load %arg16[%c32_104, %c0_105] : memref<64x96xf32, #tpu.memory_space<vmem>>, vector<8x96xf32>
    %cst_106 = arith.constant dense<0.000000e+00> : vector<8x96xf32>
    %314 = tpu.matmul %311, %212, %cst_106 {dimension_numbers = #tpu.dot_dimension_numbers<[1], [0], [0], [1], [0, 0, 1, 1], [], []>} : vector<8x32xf32>, vector<32x96xf32>, vector<8x96xf32> -> vector<8x96xf32>
    %315 = vector.extract_strided_slice %313 {offsets = [0, 0], sizes = [8, 64], strides = [1, 1]} : vector<8x96xf32> to vector<8x64xf32>
    %316 = vector.extract_strided_slice %314 {offsets = [0, 0], sizes = [8, 64], strides = [1, 1]} : vector<8x96xf32> to vector<8x64xf32>
    %317 = arith.addf %315, %316 : vector<8x64xf32>
    %318 = arith.negf %317 : vector<8x64xf32>
    %319 = math.exp %318 : vector<8x64xf32>
    %cst_107 = arith.constant 1.000000e+00 : f32
    %320 = vector.broadcast %cst_107 : f32 to vector<8x64xf32>
    %321 = arith.addf %320, %319 : vector<8x64xf32>
    %322 = arith.divf %320, %321 : vector<8x64xf32>
    %323 = vector.extract_strided_slice %322 {offsets = [0, 0], sizes = [8, 32], strides = [1, 1]} : vector<8x64xf32> to vector<8x32xf32>
    %324 = vector.extract_strided_slice %322 {offsets = [0, 32], sizes = [8, 32], strides = [1, 1]} : vector<8x64xf32> to vector<8x32xf32>
    %325 = vector.extract_strided_slice %313 {offsets = [0, 64], sizes = [8, 32], strides = [1, 1]} : vector<8x96xf32> to vector<8x32xf32>
    %326 = vector.extract_strided_slice %314 {offsets = [0, 64], sizes = [8, 32], strides = [1, 1]} : vector<8x96xf32> to vector<8x32xf32>
    %327 = arith.addf %326, %215 : vector<8x32xf32>
    %328 = arith.mulf %323, %327 : vector<8x32xf32>
    %329 = arith.addf %325, %328 : vector<8x32xf32>
    %330 = math.tanh %329 : vector<8x32xf32>
    %cst_108 = arith.constant 1.000000e+00 : f32
    %331 = vector.broadcast %cst_108 : f32 to vector<8x32xf32>
    %332 = arith.subf %331, %324 : vector<8x32xf32>
    %333 = arith.mulf %332, %330 : vector<8x32xf32>
    %334 = arith.mulf %324, %311 : vector<8x32xf32>
    %335 = arith.addf %333, %334 : vector<8x32xf32>
    %c32_109 = arith.constant 32 : index
    %c0_110 = arith.constant 0 : index
    %336 = vector.load %arg15[%c32_109, %c0_110] : memref<64x32xf32, #tpu.memory_space<vmem>>, vector<8x32xf32>
    tpu.vector_store %arg15[%c32_109, %c0_110], %335 {strides = array<i32>} : memref<64x32xf32, #tpu.memory_space<vmem>>, vector<8x32xf32>,
    %c40_111 = arith.constant 40 : index
    %c0_112 = arith.constant 0 : index
    %337 = vector.load %arg16[%c40_111, %c0_112] : memref<64x96xf32, #tpu.memory_space<vmem>>, vector<8x96xf32>
    %cst_113 = arith.constant dense<0.000000e+00> : vector<8x96xf32>
    %338 = tpu.matmul %335, %212, %cst_113 {dimension_numbers = #tpu.dot_dimension_numbers<[1], [0], [0], [1], [0, 0, 1, 1], [], []>} : vector<8x32xf32>, vector<32x96xf32>, vector<8x96xf32> -> vector<8x96xf32>
    %339 = vector.extract_strided_slice %337 {offsets = [0, 0], sizes = [8, 64], strides = [1, 1]} : vector<8x96xf32> to vector<8x64xf32>
    %340 = vector.extract_strided_slice %338 {offsets = [0, 0], sizes = [8, 64], strides = [1, 1]} : vector<8x96xf32> to vector<8x64xf32>
    %341 = arith.addf %339, %340 : vector<8x64xf32>
    %342 = arith.negf %341 : vector<8x64xf32>
    %343 = math.exp %342 : vector<8x64xf32>
    %cst_114 = arith.constant 1.000000e+00 : f32
    %344 = vector.broadcast %cst_114 : f32 to vector<8x64xf32>
    %345 = arith.addf %344, %343 : vector<8x64xf32>
    %346 = arith.divf %344, %345 : vector<8x64xf32>
    %347 = vector.extract_strided_slice %346 {offsets = [0, 0], sizes = [8, 32], strides = [1, 1]} : vector<8x64xf32> to vector<8x32xf32>
    %348 = vector.extract_strided_slice %346 {offsets = [0, 32], sizes = [8, 32], strides = [1, 1]} : vector<8x64xf32> to vector<8x32xf32>
    %349 = vector.extract_strided_slice %337 {offsets = [0, 64], sizes = [8, 32], strides = [1, 1]} : vector<8x96xf32> to vector<8x32xf32>
    %350 = vector.extract_strided_slice %338 {offsets = [0, 64], sizes = [8, 32], strides = [1, 1]} : vector<8x96xf32> to vector<8x32xf32>
    %351 = arith.addf %350, %215 : vector<8x32xf32>
    %352 = arith.mulf %347, %351 : vector<8x32xf32>
    %353 = arith.addf %349, %352 : vector<8x32xf32>
    %354 = math.tanh %353 : vector<8x32xf32>
    %cst_115 = arith.constant 1.000000e+00 : f32
    %355 = vector.broadcast %cst_115 : f32 to vector<8x32xf32>
    %356 = arith.subf %355, %348 : vector<8x32xf32>
    %357 = arith.mulf %356, %354 : vector<8x32xf32>
    %358 = arith.mulf %348, %335 : vector<8x32xf32>
    %359 = arith.addf %357, %358 : vector<8x32xf32>
    %c40_116 = arith.constant 40 : index
    %c0_117 = arith.constant 0 : index
    %360 = vector.load %arg15[%c40_116, %c0_117] : memref<64x32xf32, #tpu.memory_space<vmem>>, vector<8x32xf32>
    tpu.vector_store %arg15[%c40_116, %c0_117], %359 {strides = array<i32>} : memref<64x32xf32, #tpu.memory_space<vmem>>, vector<8x32xf32>,
    %c48_118 = arith.constant 48 : index
    %c0_119 = arith.constant 0 : index
    %361 = vector.load %arg16[%c48_118, %c0_119] : memref<64x96xf32, #tpu.memory_space<vmem>>, vector<8x96xf32>
    %cst_120 = arith.constant dense<0.000000e+00> : vector<8x96xf32>
    %362 = tpu.matmul %359, %212, %cst_120 {dimension_numbers = #tpu.dot_dimension_numbers<[1], [0], [0], [1], [0, 0, 1, 1], [], []>} : vector<8x32xf32>, vector<32x96xf32>, vector<8x96xf32> -> vector<8x96xf32>
    %363 = vector.extract_strided_slice %361 {offsets = [0, 0], sizes = [8, 64], strides = [1, 1]} : vector<8x96xf32> to vector<8x64xf32>
    %364 = vector.extract_strided_slice %362 {offsets = [0, 0], sizes = [8, 64], strides = [1, 1]} : vector<8x96xf32> to vector<8x64xf32>
    %365 = arith.addf %363, %364 : vector<8x64xf32>
    %366 = arith.negf %365 : vector<8x64xf32>
    %367 = math.exp %366 : vector<8x64xf32>
    %cst_121 = arith.constant 1.000000e+00 : f32
    %368 = vector.broadcast %cst_121 : f32 to vector<8x64xf32>
    %369 = arith.addf %368, %367 : vector<8x64xf32>
    %370 = arith.divf %368, %369 : vector<8x64xf32>
    %371 = vector.extract_strided_slice %370 {offsets = [0, 0], sizes = [8, 32], strides = [1, 1]} : vector<8x64xf32> to vector<8x32xf32>
    %372 = vector.extract_strided_slice %370 {offsets = [0, 32], sizes = [8, 32], strides = [1, 1]} : vector<8x64xf32> to vector<8x32xf32>
    %373 = vector.extract_strided_slice %361 {offsets = [0, 64], sizes = [8, 32], strides = [1, 1]} : vector<8x96xf32> to vector<8x32xf32>
    %374 = vector.extract_strided_slice %362 {offsets = [0, 64], sizes = [8, 32], strides = [1, 1]} : vector<8x96xf32> to vector<8x32xf32>
    %375 = arith.addf %374, %215 : vector<8x32xf32>
    %376 = arith.mulf %371, %375 : vector<8x32xf32>
    %377 = arith.addf %373, %376 : vector<8x32xf32>
    %378 = math.tanh %377 : vector<8x32xf32>
    %cst_122 = arith.constant 1.000000e+00 : f32
    %379 = vector.broadcast %cst_122 : f32 to vector<8x32xf32>
    %380 = arith.subf %379, %372 : vector<8x32xf32>
    %381 = arith.mulf %380, %378 : vector<8x32xf32>
    %382 = arith.mulf %372, %359 : vector<8x32xf32>
    %383 = arith.addf %381, %382 : vector<8x32xf32>
    %c48_123 = arith.constant 48 : index
    %c0_124 = arith.constant 0 : index
    %384 = vector.load %arg15[%c48_123, %c0_124] : memref<64x32xf32, #tpu.memory_space<vmem>>, vector<8x32xf32>
    tpu.vector_store %arg15[%c48_123, %c0_124], %383 {strides = array<i32>} : memref<64x32xf32, #tpu.memory_space<vmem>>, vector<8x32xf32>,
    %c56_125 = arith.constant 56 : index
    %c0_126 = arith.constant 0 : index
    %385 = vector.load %arg16[%c56_125, %c0_126] : memref<64x96xf32, #tpu.memory_space<vmem>>, vector<8x96xf32>
    %cst_127 = arith.constant dense<0.000000e+00> : vector<8x96xf32>
    %386 = tpu.matmul %383, %212, %cst_127 {dimension_numbers = #tpu.dot_dimension_numbers<[1], [0], [0], [1], [0, 0, 1, 1], [], []>} : vector<8x32xf32>, vector<32x96xf32>, vector<8x96xf32> -> vector<8x96xf32>
    %387 = vector.extract_strided_slice %385 {offsets = [0, 0], sizes = [8, 64], strides = [1, 1]} : vector<8x96xf32> to vector<8x64xf32>
    %388 = vector.extract_strided_slice %386 {offsets = [0, 0], sizes = [8, 64], strides = [1, 1]} : vector<8x96xf32> to vector<8x64xf32>
    %389 = arith.addf %387, %388 : vector<8x64xf32>
    %390 = arith.negf %389 : vector<8x64xf32>
    %391 = math.exp %390 : vector<8x64xf32>
    %cst_128 = arith.constant 1.000000e+00 : f32
    %392 = vector.broadcast %cst_128 : f32 to vector<8x64xf32>
    %393 = arith.addf %392, %391 : vector<8x64xf32>
    %394 = arith.divf %392, %393 : vector<8x64xf32>
    %395 = vector.extract_strided_slice %394 {offsets = [0, 0], sizes = [8, 32], strides = [1, 1]} : vector<8x64xf32> to vector<8x32xf32>
    %396 = vector.extract_strided_slice %394 {offsets = [0, 32], sizes = [8, 32], strides = [1, 1]} : vector<8x64xf32> to vector<8x32xf32>
    %397 = vector.extract_strided_slice %385 {offsets = [0, 64], sizes = [8, 32], strides = [1, 1]} : vector<8x96xf32> to vector<8x32xf32>
    %398 = vector.extract_strided_slice %386 {offsets = [0, 64], sizes = [8, 32], strides = [1, 1]} : vector<8x96xf32> to vector<8x32xf32>
    %399 = arith.addf %398, %215 : vector<8x32xf32>
    %400 = arith.mulf %395, %399 : vector<8x32xf32>
    %401 = arith.addf %397, %400 : vector<8x32xf32>
    %402 = math.tanh %401 : vector<8x32xf32>
    %cst_129 = arith.constant 1.000000e+00 : f32
    %403 = vector.broadcast %cst_129 : f32 to vector<8x32xf32>
    %404 = arith.subf %403, %396 : vector<8x32xf32>
    %405 = arith.mulf %404, %402 : vector<8x32xf32>
    %406 = arith.mulf %396, %383 : vector<8x32xf32>
    %407 = arith.addf %405, %406 : vector<8x32xf32>
    %c56_130 = arith.constant 56 : index
    %c0_131 = arith.constant 0 : index
    %408 = vector.load %arg15[%c56_130, %c0_131] : memref<64x32xf32, #tpu.memory_space<vmem>>, vector<8x32xf32>
    tpu.vector_store %arg15[%c56_130, %c0_131], %407 {strides = array<i32>} : memref<64x32xf32, #tpu.memory_space<vmem>>, vector<8x32xf32>,
    %c0_132 = arith.constant 0 : index
    %c0_133 = arith.constant 0 : index
    %409 = vector.load %arg15[%c0_132, %c0_133] : memref<64x32xf32, #tpu.memory_space<vmem>>, vector<64x32xf32>
    %c0_134 = arith.constant 0 : index
    %c0_135 = arith.constant 0 : index
    %410 = vector.load %arg10[%c0_134, %c0_135] : memref<32x128xf32, #tpu.memory_space<vmem>>, vector<32x128xf32>
    %cst_136 = arith.constant dense<0.000000e+00> : vector<64x128xf32>
    %411 = tpu.matmul %409, %410, %cst_136 {dimension_numbers = #tpu.dot_dimension_numbers<[1], [0], [0], [1], [0, 0, 1, 1], [], []>} : vector<64x32xf32>, vector<32x128xf32>, vector<64x128xf32> -> vector<64x128xf32>
    %c0_137 = arith.constant 0 : index
    %c0_138 = arith.constant 0 : index
    %412 = vector.load %arg11[%c0_137, %c0_138] : memref<1x128xf32, #tpu.memory_space<vmem>>, vector<1x128xf32>
    %413 = vector.broadcast %412 : vector<1x128xf32> to vector<64x128xf32>
    %414 = arith.addf %411, %413 : vector<64x128xf32>
    %415 = math.tanh %414 : vector<64x128xf32>
    %c0_139 = arith.constant 0 : index
    %c0_140 = arith.constant 0 : index
    %416 = vector.load %arg12[%c0_139, %c0_140] : memref<1x128xf32, #tpu.memory_space<vmem>>, vector<1x128xf32>
    %417 = vector.broadcast %416 : vector<1x128xf32> to vector<64x128xf32>
    %418 = arith.mulf %415, %417 : vector<64x128xf32>
    %c0_141 = arith.constant 0 : index
    %c0_142 = arith.constant 0 : index
    %419 = vector.load %arg13[%c0_141, %c0_142] : memref<1x128xf32, #tpu.memory_space<vmem>>, vector<1x128xf32>
    %420 = vector.broadcast %419 : vector<1x128xf32> to vector<64x128xf32>
    %421 = arith.addf %418, %420 : vector<64x128xf32>
    %c0_143 = arith.constant 0 : index
    %c0_144 = arith.constant 0 : index
    %c0_145 = arith.constant 0 : index
    %422 = vector.load %arg14[%c0_143, %c0_144, %c0_145] : memref<1x64x128xf32, #tpu.memory_space<vmem>>, vector<1x64x128xf32>
    %423 = vector.shape_cast %422 : vector<1x64x128xf32> to vector<64x128xf32>
    %424 = vector.shape_cast %421 : vector<64x128xf32> to vector<1x64x128xf32>
    tpu.vector_store %arg14[%c0_143, %c0_144, %c0_145], %424 {strides = array<i32>} : memref<1x64x128xf32, #tpu.memory_space<vmem>>, vector<1x64x128xf32>,
    return
  }
  func.func @transform_0(%arg0: i32) -> (i32, i32, i32) {
    %c0_i32 = arith.constant 0 : i32
    %c0_i32_0 = arith.constant 0 : i32
    %c0_i32_1 = arith.constant 0 : i32
    return %arg0, %c0_i32, %c0_i32_0 : i32, i32, i32
  }
  func.func @transform_1(%arg0: i32) -> (i32, i32) {
    %c0_i32 = arith.constant 0 : i32
    %c0_i32_0 = arith.constant 0 : i32
    %c0_i32_1 = arith.constant 0 : i32
    return %c0_i32, %c0_i32_0 : i32, i32
  }
  func.func @transform_2(%arg0: i32) -> (i32, i32) {
    %c0_i32 = arith.constant 0 : i32
    %c0_i32_0 = arith.constant 0 : i32
    %c0_i32_1 = arith.constant 0 : i32
    return %c0_i32, %c0_i32_0 : i32, i32
  }
  func.func @transform_3(%arg0: i32) -> (i32, i32) {
    %c0_i32 = arith.constant 0 : i32
    %c0_i32_0 = arith.constant 0 : i32
    %c0_i32_1 = arith.constant 0 : i32
    return %c0_i32, %c0_i32_0 : i32, i32
  }
  func.func @transform_4(%arg0: i32) -> (i32, i32) {
    %c0_i32 = arith.constant 0 : i32
    %c0_i32_0 = arith.constant 0 : i32
    %c0_i32_1 = arith.constant 0 : i32
    return %c0_i32, %c0_i32_0 : i32, i32
  }
  func.func @transform_5(%arg0: i32) -> (i32, i32) {
    %c0_i32 = arith.constant 0 : i32
    %c0_i32_0 = arith.constant 0 : i32
    %c0_i32_1 = arith.constant 0 : i32
    return %c0_i32, %c0_i32_0 : i32, i32
  }
  func.func @transform_6(%arg0: i32) -> (i32, i32) {
    %c0_i32 = arith.constant 0 : i32
    %c0_i32_0 = arith.constant 0 : i32
    %c0_i32_1 = arith.constant 0 : i32
    return %c0_i32, %c0_i32_0 : i32, i32
  }
  func.func @transform_7(%arg0: i32) -> (i32, i32) {
    %c0_i32 = arith.constant 0 : i32
    %c0_i32_0 = arith.constant 0 : i32
    %c0_i32_1 = arith.constant 0 : i32
    return %c0_i32, %c0_i32_0 : i32, i32
  }
  func.func @transform_8(%arg0: i32) -> (i32, i32) {
    %c0_i32 = arith.constant 0 : i32
    %c0_i32_0 = arith.constant 0 : i32
    %c0_i32_1 = arith.constant 0 : i32
    return %c0_i32, %c0_i32_0 : i32, i32
  }
  func.func @transform_9(%arg0: i32) -> (i32, i32) {
    %c0_i32 = arith.constant 0 : i32
    %c0_i32_0 = arith.constant 0 : i32
    %c0_i32_1 = arith.constant 0 : i32
    return %c0_i32, %c0_i32_0 : i32, i32
  }
  func.func @transform_10(%arg0: i32) -> (i32, i32) {
    %c0_i32 = arith.constant 0 : i32
    %c0_i32_0 = arith.constant 0 : i32
    %c0_i32_1 = arith.constant 0 : i32
    return %c0_i32, %c0_i32_0 : i32, i32
  }
  func.func @transform_11(%arg0: i32) -> (i32, i32) {
    %c0_i32 = arith.constant 0 : i32
    %c0_i32_0 = arith.constant 0 : i32
    %c0_i32_1 = arith.constant 0 : i32
    return %c0_i32, %c0_i32_0 : i32, i32
  }
  func.func @transform_12(%arg0: i32) -> (i32, i32) {
    %c0_i32 = arith.constant 0 : i32
    %c0_i32_0 = arith.constant 0 : i32
    %c0_i32_1 = arith.constant 0 : i32
    return %c0_i32, %c0_i32_0 : i32, i32
  }
  func.func @transform_13(%arg0: i32) -> (i32, i32, i32) {
    %c0_i32 = arith.constant 0 : i32
    %c0_i32_0 = arith.constant 0 : i32
    %c0_i32_1 = arith.constant 0 : i32
    return %arg0, %c0_i32, %c0_i32_0 : i32, i32, i32
  }
}

</mosaic_0001>

<bundles_post_ra>
// kernel: tpu_custom_call.1
= control target key start
LH: loop header
LB: loop body
LE: loop exit
PB: predicated region body
PF: predicated region fallthrough
CT: control target
= control target key end

     0   :  { %18 = vsyncpa [#allocation5], 0  ;;  %s3498_s0 = inlined_call_operand.vmem [shape: f32[1,64,6], index: 0, kind: input, shape index: {}]   ;;  %s3499_s1 = inlined_call_operand.hbm [shape: f32[6,96], index: 1, kind: input, shape index: {}]   ;;  %s3500_s2 = inlined_call_operand.vmem [shape: f32[32,96], index: 2, kind: input, shape index: {}]   ;;  %s3501_s3 = inlined_call_operand.vmem [shape: f32[1,96], index: 3, kind: input, shape index: {}]   ;;  %s3502_s4 = inlined_call_operand.vmem [shape: f32[1,32], index: 4, kind: input, shape index: {}]   ;;  %s3503_s5 = inlined_call_operand.vmem [shape: f32[32,96], index: 5, kind: input, shape index: {}]   ;;  %s3504_s6 = inlined_call_operand.hbm [shape: f32[32,96], index: 6, kind: input, shape index: {}]   ;;  %s3505_s7 = inlined_call_operand.vmem [shape: f32[1,96], index: 7, kind: input, shape index: {}]   ;;  %s3506_s8 = inlined_call_operand.vmem [shape: f32[1,32], index: 8, kind: input, shape index: {}]   ;;  %s3507_s9 = inlined_call_operand.hbm [shape: f32[32,128], index: 9, kind: input, shape index: {}]   ;;  %s3508_s10 = inlined_call_operand.vmem [shape: f32[1,128], index: 10, kind: input, shape index: {}]   ;;  %s3509_s11 = inlined_call_operand.vmem [shape: f32[1,128], index: 11, kind: input, shape index: {}]   ;;  %s3510_s12 = inlined_call_operand.vmem [shape: f32[1,128], index: 12, kind: input, shape index: {}]   ;;  %s3511_s13 = inlined_call_operand.hbm [shape: f32[1,64,128], index: 13, kind: output, shape index: {}]  }
   0x1   :  { %19 = vsyncpa [#allocation8], 0 }
   0x2   :  { %20 = vsyncpa [#allocation6], 0  ;;  %s2932_s25 = smov [#allocation7]  }
   0x3   :  { %s46_s26 = sshll.u32 %s2932_s25, 4  ;;  %s47_s26 = int_to_ptr.vmem [resolvable:$true] %s46_s26 }
   0x4   :  { %s2854_s27 = scalar_lea.vmem %s47_s26, 512  ;;  %p2859_p1 = scmp.lt.s32.totalorder %s47_s26, %s47_s26 }
   0x5   :  { %p2855_p0 = scmp.ne.s32.totalorder %s47_s26, %s2854_s27  ;;  %p2860_p2 = scmp.lt.s32.totalorder %s2854_s27, %s2854_s27 }
   0x7   :  { %p2861_p3 = por %p2860_p2, %p2859_p1 }
   0x9   :  { %p2862_p4 = pnand %p2861_p3, %p2855_p0 }
   0xb   :  { %2865 = shalt.err (!%p2862_p4)
}
   0xc   :  { %s2933_s28 = smov 128   ;;  %s2934_s29 = smov 8  }
   0xd   :  { %52 = dma.hbm_to_vmem [thread:$0]  %s3504_s6, 512, %s47_s26, [#allocation8], %s2933_s28, %s2933_s28, %s2934_s29  }
   0xe   :  { %s2935_s15 = smov [#allocation4]   ;;  %s2936_s17 = smov [#allocation9]  }
   0xf   :  { %s29_s16 = sshll.u32 %s2935_s15, 4  ;;  %s62_s18 = sshll.u32 %s2936_s17, 4  ;;  %s30_s16 = int_to_ptr.vmem [resolvable:$true] %s29_s16  ;;  %s63_s18 = int_to_ptr.vmem [resolvable:$true] %s62_s18 }
  0x10   :  { %s2874_s19 = scalar_lea.vmem %s30_s16, 128  ;;  %p2879_p6 = scmp.lt.s32.totalorder %s30_s16, %s30_s16 }
  0x11   :  { %p2875_p5 = scmp.ne.s32.totalorder %s30_s16, %s2874_s19  ;;  %p2880_p7 = scmp.lt.s32.totalorder %s2874_s19, %s2874_s19 }
  0x13   :  { %p2881_p8 = por %p2880_p7, %p2879_p6 }
  0x15   :  { %p2882_p9 = pnand %p2881_p8, %p2875_p5 }
  0x17   :  { %2885 = shalt.err (!%p2882_p9)
}
  0x18   :  { %32 = dma.hbm_to_vmem [thread:$0]  %s3499_s1, 128, %s30_s16, [#allocation5]  }
  0x19   :  { %s2894_s22 = scalar_lea.vmem %s63_s18, 512  ;;  %p2899_p11 = scmp.lt.s32.totalorder %s63_s18, %s63_s18 }
  0x1a   :  { %p2895_p10 = scmp.ne.s32.totalorder %s63_s18, %s2894_s22  ;;  %p2900_p12 = scmp.lt.s32.totalorder %s2894_s22, %s2894_s22 }
  0x1c   :  { %p2901_p13 = por %p2900_p12, %p2899_p11 }
  0x1e   :  { %p2902_p0 = pnand %p2901_p13, %p2895_p10 }
  0x20   :  { %2905 = shalt.err (!%p2902_p0)
}
  0x21   :  { %68 = dma.hbm_to_vmem [thread:$0]  %s3507_s9, 512, %s63_s18, [#allocation8], %s2933_s28, %s2933_s28, %s2934_s29  }
  0x22   :  { %2926 = dma.done.wait [#allocation5], 128  }
  0x23   :  { %2927 = vsyncadd [#allocation5], 4294967168 }
  0x24   :  { %2928 = dma.done.wait [#allocation8], 1024  }
  0x25   :  { %2929 = vsyncadd [#allocation8], 4294966272  ;;  %vm125_vm0 = vcmask 1045504   ;;  %v92_v0 = vld [vmem:[#allocation4] sm:$0x3f]  ;;  %vm100_vm1 = vcmask 48128  }
  0x26   :  { %v84_v1 = vld [vmem:[%s3498_s0] sm:$0xff]  ;;  %2492 = vmatprep.subr.msk.mxu0 %vm125_vm0, %v92_v0  ;;  %2722 = vmatprep.subr.msk.mxu1 %vm125_vm0, %v92_v0  ;;  %v85_v3 = vld [vmem:[%s3498_s0 + $0x8] sm:$0xff]  ;;  %v90_v5 = vld [vmem:[%s3498_s0 + $0x30] sm:$0xff]  ;;  %v2937_v8 = vmov 0.0   ;;  %vm2939_vm2 = vmmov 0   ;;  %vm234_vm3 = vcmask 785408  }
  0x27   :  { %v88_v2 = vld [vmem:[%s3498_s0 + $0x20] sm:$0xff]  ;;  %v89_v4 = vld [vmem:[%s3498_s0 + $0x28] sm:$0xff]  ;;  %2493 = vmatpush3.msk.msra.mxu0 %vm125_vm0, %v92_v0  ;;  %2723 = vmatpush3.msk.msra.mxu1 %vm125_vm0, %v92_v0  ;;  %v3047_v6 = vld [vmem:[%s3500_s2 + $0x18] sm:$0xff]  ;;  %vm254_vm4 = vcmask 261120  }
  0x28   :  { %2494 = vmatprep.mubr.msk.f32.mxu0 %vm100_vm1, %v84_v1  ;;  %2500 = vmatprep.mubr.msk.f32.mxu1 %vm100_vm1, %v88_v2  ;;  %v2327_v7 = vld [vmem:[%s3502_s4] ss:$0 sm:$0xff]  ;;  %v3059_v9 = vld [vmem:[%s3500_s2 + $0x10] sm:$0xff]  ;;  %v91_v10 = vld [vmem:[%s3498_s0 + $0x38] sm:$0xff]  ;;  %s2938_s4 = smov 64  }
  0x29   :  { %2495 = vmatmul.mubr.msk.f32.vlgmr.msra.gmra.mxu0 %vm100_vm1, %v85_v3  ;;  %2501 = vmatmul.mubr.msk.f32.vlgmr.msra.gmra.mxu1 %vm100_vm1, %v89_v4  ;;  %v3070_v11 = vld [vmem:[%s3500_s2 + $0x8] sm:$0xff]  ;;  %v3080_v12 = vld [vmem:[%s3500_s2] sm:$0xff]  ;;  %v86_v60 = vld [vmem:[%s3498_s0 + $0x10] sm:$0xff] }
  0x2a   :  { %2506 = vmatprep.subr.mxu1 %v2937_v8  ;;  %2503 = vmatprep.mubr.msk.f32.mxu1 %vm100_vm1, %v90_v5  ;;  %v3109_v13 = vld [vmem:[%s3501_s3] ss:$0 sm:$0xff]  ;;  %s2940_s3 = smov 96   ;;  %v87_v61 = vld [vmem:[%s3498_s0 + $0x18] sm:$0xff] }
  0x2b   :  { %2507 = vmatpush3.msra.mxu1 %v3047_v6  ;;  %335 = vrot.lane.b32.xlu0 %v2327_v7, %s2938_s4 }
  0x2c   :  { %2508 = vmatprep.subr.mxu1 %v2937_v8  ;;  %2528 = vmatprep.subr.mxu0 %v2937_v8 }
  0x2d   :  { %2509 = vmatpush3.msra.mxu1 %v3059_v9  ;;  %2529 = vmatpush3.msra.mxu0 %v3047_v6 }
  0x2e   :  { %2504 = vmatmul.mubr.msk.f32.gmra.mxu1 %vm100_vm1, %v91_v10  ;;  %2510 = vmatprep.subr.mxu1 %v2937_v8 }
  0x2f   :  { %2511 = vmatpush3.msra.mxu1 %v3070_v11  ;;  %2514 = vmatprep.mubr.msk.f32.mxu1 %vm2939_vm2, %v2937_v8 }
  0x30   :  { %2512 = vmatprep.subr.mxu1 %v2937_v8  ;;  %2530 = vmatprep.subr.mxu0 %v2937_v8 }
  0x31   :  { %2513 = vmatpush3.msra.mxu1 %v3080_v12  ;;  %2531 = vmatpush3.msra.mxu0 %v3059_v9 }
  0x32   :  { %2515 = vmatmul.mubr.f32.vlgmr.msra.gmra.mxu1 %v2937_v8  ;;  %2517 = vmatprep.subr.mxu1 %v2937_v8 }
  0x33   :  { %2518 = vmatpush3.msra.mxu1 %v3047_v6  ;;  %2525 = vmatprep.mubr.msk.f32.mxu1 %vm2939_vm2, %v2937_v8 }
  0x34   :  { %2519 = vmatprep.subr.mxu1 %v2937_v8  ;;  %2532 = vmatprep.subr.mxu0 %v2937_v8 }
  0x35   :  { %2520 = vmatpush3.msra.mxu1 %v3059_v9  ;;  %2533 = vmatpush3.msra.mxu0 %v3070_v11 }
  0x36   :  { %2521 = vmatprep.subr.mxu1 %v2937_v8  ;;  %2534 = vmatprep.subr.mxu0 %v2937_v8 }
  0x37   :  { %2522 = vmatpush3.msra.mxu1 %v3070_v11  ;;  %2535 = vmatpush3.msra.mxu0 %v3080_v12 }
  0x38   :  { %2523 = vmatprep.subr.mxu1 %v2937_v8  ;;  %2550 = vmatprep.subr.mxu0 %v2937_v8 }
  0x39   :  { %2524 = vmatpush3.msra.mxu1 %v3080_v12  ;;  %2497 = vmatprep.mubr.msk.f32.mxu0 %vm100_vm1, %v86_v60 }
  0x3a   :  { %2539 = vmatprep.subr.mxu1 %v2937_v8  ;;  %2498 = vmatmul.mubr.msk.f32.gmra.mxu0 %vm100_vm1, %v87_v61 }
  0x3b   :  { %2536 = vmatprep.mubr.msk.f32.mxu0 %vm2939_vm2, %v2937_v8 }
  0x9d   :  { %v3120_v25 = vpop.permute.xlu0 %335 }
  0xe9   :  { %v2496_v14 = vpop.f32.mrf.mxu0  ;;  %v2502_v15 = vpop.f32.mrf.mxu1 }
  0xea   :  { %v201_v16 = vadd.f32 %v2496_v14, %v3109_v13  ;;  %v221_v17 = vadd.f32 %v2502_v15, %v3109_v13 }
  0xeb   :  { %v195_v18 = vpop.f32.mrf.mxu0  ;;  %v215_v19 = vpop.f32.mrf.mxu1 }
  0xec   :  { %236 = vst.msk [vmem:[#allocation3 + $0x8] sm:$0xff] %vm234_vm3, %v201_v16  ;;  %240 = vst.msk [vmem:[#allocation3 + $0x28] sm:$0xff] %vm234_vm3, %v221_v17  ;;  %v196_v20 = vadd.f32 %v3109_v13, %v195_v18  ;;  %v216_v21 = vadd.f32 %v3109_v13, %v215_v19 }
  0xee   :  { %235 = vst.msk [vmem:[#allocation3] sm:$0xff] %vm234_vm3, %v196_v20  ;;  %239 = vst.msk [vmem:[#allocation3 + $0x20] sm:$0xff] %vm234_vm3, %v216_v21  ;;  %v2505_v22 = vpop.f32.mrf.mxu1 }
  0xef   :  { %v231_v23 = vadd.f32 %v2505_v22, %v3109_v13 }
  0xf0   :  { %v225_v24 = vpop.f32.mrf.mxu1 }
  0xf1   :  { %242 = vst.msk [vmem:[#allocation3 + $0x38] sm:$0xff] %vm234_vm3, %v231_v23  ;;  %v226_v26 = vadd.f32 %v3109_v13, %v225_v24 }
  0xf2   :  { %v324_v27 = vpop.f32.mrf.mxu1 }
  0xf3   :  { %241 = vst.msk [vmem:[#allocation3 + $0x30] sm:$0xff] %vm234_vm3, %v226_v26  ;;  %v338_v28 = vadd.f32 %v3120_v25, %v324_v27  ;;  %v363_v50 = vld [vmem:[#allocation3 + $0x8] sm:$0xff] }
  0xf4   :  { %v2516_v29 = vpop.f32.mrf.mxu1 }
  0xf5   :  { %340 = vrot.lane.b32.xlu0 %v338_v28, %s2938_s4  ;;  %v253_v30 = vld [vmem:[#allocation3] sm:$0xff] }
  0xf6   :  { %v328_v31 = vadd.f32 %v324_v27, %v253_v30 }
  0xf8   :  { %v2328_v32 = vmul.f32 -1.442695, %v328_v31 }
  0xfa   :  { %2734 = vpow2.f32 %v2328_v32  ;;  %v2499_v4 = vpop.f32.mrf.mxu0 }
  0xfb   :  { %v211_v5 = vadd.f32 %v2499_v4, %v3109_v13 }
  0xfc   :  { %v205_v7 = vpop.f32.mrf.mxu0 }
  0xfd   :  { %238 = vst.msk [vmem:[#allocation3 + $0x18] sm:$0xff] %vm234_vm3, %v211_v5  ;;  %v206_v10 = vadd.f32 %v3109_v13, %v205_v7 }
  0xff   :  { %237 = vst.msk [vmem:[#allocation3 + $0x10] sm:$0xff] %vm234_vm3, %v206_v10 }
 0x106   :  { %v468_v17 = vld [vmem:[#allocation3 + $0x10] sm:$0xff] }
 0x107   :  { %v2735_v33 = vpop.eup %2734 }
 0x108   :  { %v332_v34 = vadd.f32 1.0, %v2735_v33 }
 0x10a   :  { %2736 = vrcp.f32 %v332_v34 }
 0x117   :  { %v2737_v35 = vpop.eup %2736 }
 0x118   :  { %v350_v41 = vsub.f32 1.0, %v2737_v35  ;;  %v356_v43 = vmul.f32 0.0, %v2737_v35 }
 0x167   :  { %v341_v36 = vpop.permute.xlu0 %340 }
 0x168   :  { %v343_v37 = vmul.f32 %v2737_v35, %v341_v36 }
 0x16a   :  { %345 = vrot.lane.b32.xlu1 %v343_v37, %s2938_s4 }
 0x1dc   :  { %v346_v38 = vpop.permute.xlu1 %345 }
 0x1dd   :  { %v348_v39 = vadd.f32 %v346_v38, %v253_v30  ;;  %v573_v38 = vld [vmem:[#allocation3 + $0x18] sm:$0xff] }
 0x1df   :  { %2738 = vtanh.f32 %v348_v39 }
 0x1ec   :  { %v2739_v40 = vpop.eup %2738 }
 0x1ed   :  { %352 = vrot.lane.b32.xlu1 %v2739_v40, %s2940_s3 }
 0x25f   :  { %v353_v42 = vpop.permute.xlu1 %352 }
 0x260   :  { %v355_v44 = vmul.f32 %v353_v42, %v350_v41 }
 0x262   :  { %v357_v45 = vadd.f32 %v356_v43, %v355_v44 }
 0x264   :  { %359 = vrot.lane.b32.xlu0 %v357_v45, %s2940_s3 }
 0x2d6   :  { %v360_v46 = vpop.permute.xlu0 %359 }
 0x2d7   :  { %362 = vst.msk [vmem:[#allocation2] sm:$0xff] %vm254_vm4, %v360_v46  ;;  %2526 = vmatmul.mubr.msk.f32.vlgmr.msra.gmra.mxu1 %vm254_vm4, %v360_v46 }
 0x2d8   :  { %2540 = vmatpush3.msra.mxu1 %v3047_v6  ;;  %2547 = vmatprep.mubr.msk.f32.mxu1 %vm2939_vm2, %v2937_v8 }
 0x2d9   :  { %2541 = vmatprep.subr.mxu1 %v2937_v8 }
 0x2da   :  { %2542 = vmatpush3.msra.mxu1 %v3059_v9 }
 0x2db   :  { %2543 = vmatprep.subr.mxu1 %v2937_v8 }
 0x2dc   :  { %2544 = vmatpush3.msra.mxu1 %v3070_v11 }
 0x2dd   :  { %2545 = vmatprep.subr.mxu1 %v2937_v8 }
 0x2de   :  { %2546 = vmatpush3.msra.mxu1 %v3080_v12 }
 0x2df   :  { %2561 = vmatprep.subr.mxu1 %v2937_v8 }
 0x397   :  { %v432_v47 = vpop.f32.mrf.mxu1 }
 0x398   :  { %v443_v48 = vadd.f32 %v432_v47, %v3120_v25  ;;  %v436_v51 = vadd.f32 %v432_v47, %v363_v50 }
 0x399   :  { %v2527_v49 = vpop.f32.mrf.mxu1 }
 0x39a   :  { %445 = vrot.lane.b32.xlu1 %v443_v48, %s2938_s4  ;;  %v2330_v52 = vmul.f32 -1.442695, %v436_v51 }
 0x39c   :  { %2740 = vpow2.f32 %v2330_v52 }
 0x3a9   :  { %v2741_v53 = vpop.eup %2740 }
 0x3aa   :  { %v440_v54 = vadd.f32 1.0, %v2741_v53 }
 0x3ac   :  { %2742 = vrcp.f32 %v440_v54 }
 0x3b9   :  { %v2743_v55 = vpop.eup %2742 }
 0x3ba   :  { %v455_v63 = vsub.f32 1.0, %v2743_v55  ;;  %v461_v1 = vmul.f32 %v2743_v55, %v357_v45 }
 0x40c   :  { %v446_v56 = vpop.permute.xlu1 %445 }
 0x40d   :  { %v448_v57 = vmul.f32 %v2743_v55, %v446_v56 }
 0x40f   :  { %450 = vrot.lane.b32.xlu0 %v448_v57, %s2938_s4 }
 0x481   :  { %v451_v58 = vpop.permute.xlu0 %450 }
 0x482   :  { %v453_v59 = vadd.f32 %v451_v58, %v363_v50  ;;  %v678_v58 = vld [vmem:[#allocation3 + $0x20] sm:$0xff] }
 0x484   :  { %2744 = vtanh.f32 %v453_v59 }
 0x491   :  { %v2745_v62 = vpop.eup %2744 }
 0x492   :  { %457 = vrot.lane.b32.xlu1 %v2745_v62, %s2940_s3 }
 0x504   :  { %v458_v0 = vpop.permute.xlu1 %457 }
 0x505   :  { %v460_v2 = vmul.f32 %v458_v0, %v455_v63 }
 0x507   :  { %v462_v3 = vadd.f32 %v461_v1, %v460_v2 }
 0x509   :  { %464 = vrot.lane.b32.xlu0 %v462_v3, %s2940_s3 }
 0x57b   :  { %v465_v14 = vpop.permute.xlu0 %464 }
 0x57c   :  { %467 = vst.msk [vmem:[#allocation2 + $0x8] sm:$0xff] %vm254_vm4, %v465_v14  ;;  %2537 = vmatmul.mubr.msk.f32.vlgmr.msra.gmra.mxu0 %vm254_vm4, %v465_v14 }
 0x57d   :  { %2551 = vmatpush3.msra.mxu0 %v3047_v6  ;;  %2558 = vmatprep.mubr.msk.f32.mxu0 %vm2939_vm2, %v2937_v8 }
 0x57e   :  { %2552 = vmatprep.subr.mxu0 %v2937_v8 }
 0x57f   :  { %2553 = vmatpush3.msra.mxu0 %v3059_v9 }
 0x580   :  { %2554 = vmatprep.subr.mxu0 %v2937_v8 }
 0x581   :  { %2555 = vmatpush3.msra.mxu0 %v3070_v11 }
 0x582   :  { %2556 = vmatprep.subr.mxu0 %v2937_v8 }
 0x583   :  { %2557 = vmatpush3.msra.mxu0 %v3080_v12 }
 0x584   :  { %2572 = vmatprep.subr.mxu0 %v2937_v8 }
 0x63c   :  { %v537_v13 = vpop.f32.mrf.mxu0 }
 0x63d   :  { %v548_v15 = vadd.f32 %v537_v13, %v3120_v25  ;;  %v541_v18 = vadd.f32 %v537_v13, %v468_v17 }
 0x63e   :  { %v2538_v16 = vpop.f32.mrf.mxu0 }
 0x63f   :  { %550 = vrot.lane.b32.xlu1 %v548_v15, %s2938_s4  ;;  %v2332_v19 = vmul.f32 -1.442695, %v541_v18  ;;  %v783_v18 = vld [vmem:[#allocation3 + $0x28] sm:$0xff] }
 0x641   :  { %2746 = vpow2.f32 %v2332_v19 }
 0x64e   :  { %v2747_v20 = vpop.eup %2746 }
 0x64f   :  { %v545_v21 = vadd.f32 1.0, %v2747_v20 }
 0x651   :  { %2748 = vrcp.f32 %v545_v21 }
 0x65e   :  { %v2749_v22 = vpop.eup %2748 }
 0x65f   :  { %v560_v29 = vsub.f32 1.0, %v2749_v22  ;;  %v566_v31 = vmul.f32 %v2749_v22, %v462_v3 }
 0x6b1   :  { %v551_v23 = vpop.permute.xlu1 %550 }
 0x6b2   :  { %v553_v24 = vmul.f32 %v2749_v22, %v551_v23 }
 0x6b4   :  { %555 = vrot.lane.b32.xlu0 %v553_v24, %s2938_s4 }
 0x726   :  { %v556_v26 = vpop.permute.xlu0 %555 }
 0x727   :  { %v558_v27 = vadd.f32 %v556_v26, %v468_v17  ;;  %v1109_v26 = vld [vmem:[%s3503_s5 + $0x18] sm:$0xff] }
 0x729   :  { %2750 = vtanh.f32 %v558_v27 }
 0x736   :  { %v2751_v28 = vpop.eup %2750 }
 0x737   :  { %562 = vrot.lane.b32.xlu1 %v2751_v28, %s2940_s3 }
 0x7a9   :  { %v563_v30 = vpop.permute.xlu1 %562 }
 0x7aa   :  { %v565_v32 = vmul.f32 %v563_v30, %v560_v29 }
 0x7ac   :  { %v567_v33 = vadd.f32 %v566_v31, %v565_v32 }
 0x7ae   :  { %569 = vrot.lane.b32.xlu0 %v567_v33, %s2940_s3 }
 0x820   :  { %v570_v34 = vpop.permute.xlu0 %569 }
 0x821   :  { %572 = vst.msk [vmem:[#allocation2 + $0x10] sm:$0xff] %vm254_vm4, %v570_v34  ;;  %2548 = vmatmul.mubr.msk.f32.vlgmr.msra.gmra.mxu1 %vm254_vm4, %v570_v34  ;;  %v1108_v34 = vld [vmem:[%s3503_s5 + $0x10] sm:$0xff] }
 0x822   :  { %2562 = vmatpush3.msra.mxu1 %v3047_v6  ;;  %2569 = vmatprep.mubr.msk.f32.mxu1 %vm2939_vm2, %v2937_v8 }
 0x823   :  { %2563 = vmatprep.subr.mxu1 %v2937_v8 }
 0x824   :  { %2564 = vmatpush3.msra.mxu1 %v3059_v9 }
 0x825   :  { %2565 = vmatprep.subr.mxu1 %v2937_v8 }
 0x826   :  { %2566 = vmatpush3.msra.mxu1 %v3070_v11 }
 0x827   :  { %2567 = vmatprep.subr.mxu1 %v2937_v8 }
 0x828   :  { %2568 = vmatpush3.msra.mxu1 %v3080_v12 }
 0x829   :  { %2583 = vmatprep.subr.mxu1 %v2937_v8 }
 0x8e1   :  { %v642_v35 = vpop.f32.mrf.mxu1 }
 0x8e2   :  { %v653_v36 = vadd.f32 %v642_v35, %v3120_v25  ;;  %v646_v39 = vadd.f32 %v642_v35, %v573_v38  ;;  %v1098_v35 = vld [vmem:[#allocation2] sm:$0xff] }
 0x8e3   :  { %v2549_v37 = vpop.f32.mrf.mxu1 }
 0x8e4   :  { %655 = vrot.lane.b32.xlu1 %v653_v36, %s2938_s4  ;;  %v2334_v40 = vmul.f32 -1.442695, %v646_v39  ;;  %v1107_v36 = vld [vmem:[%s3503_s5 + $0x8] sm:$0xff]  ;;  %v1106_v37 = vld [vmem:[%s3503_s5] sm:$0xff]  ;;  %v1100_v39 = vld [vmem:[#allocation2 + $0x10] sm:$0xff] }
 0x8e6   :  { %2752 = vpow2.f32 %v2334_v40 }
 0x8f3   :  { %v2753_v41 = vpop.eup %2752 }
 0x8f4   :  { %v650_v42 = vadd.f32 1.0, %v2753_v41 }
 0x8f6   :  { %2754 = vrcp.f32 %v650_v42 }
 0x903   :  { %v2755_v43 = vpop.eup %2754 }
 0x904   :  { %v665_v49 = vsub.f32 1.0, %v2755_v43  ;;  %v671_v51 = vmul.f32 %v2755_v43, %v567_v33 }
 0x956   :  { %v656_v44 = vpop.permute.xlu1 %655 }
 0x957   :  { %v658_v45 = vmul.f32 %v2755_v43, %v656_v44 }
 0x959   :  { %660 = vrot.lane.b32.xlu0 %v658_v45, %s2938_s4 }
 0x9cb   :  { %v661_v46 = vpop.permute.xlu0 %660 }
 0x9cc   :  { %v663_v47 = vadd.f32 %v661_v46, %v573_v38  ;;  %v1099_v38 = vld [vmem:[#allocation2 + $0x8] sm:$0xff]  ;;  %v3257_v46 = vld [vmem:[%s3505_s7] ss:$0 sm:$0xff] }
 0x9ce   :  { %2756 = vtanh.f32 %v663_v47 }
 0x9db   :  { %v2757_v48 = vpop.eup %2756 }
 0x9dc   :  { %667 = vrot.lane.b32.xlu1 %v2757_v48, %s2940_s3 }
 0xa4e   :  { %v668_v50 = vpop.permute.xlu1 %667 }
 0xa4f   :  { %v670_v52 = vmul.f32 %v668_v50, %v665_v49 }
 0xa51   :  { %v672_v53 = vadd.f32 %v671_v51, %v670_v52 }
 0xa53   :  { %674 = vrot.lane.b32.xlu0 %v672_v53, %s2940_s3 }
 0xac5   :  { %v675_v54 = vpop.permute.xlu0 %674 }
 0xac6   :  { %677 = vst.msk [vmem:[#allocation2 + $0x18] sm:$0xff] %vm254_vm4, %v675_v54  ;;  %2559 = vmatmul.mubr.msk.f32.vlgmr.msra.gmra.mxu0 %vm254_vm4, %v675_v54 }
 0xac7   :  { %2573 = vmatpush3.msra.mxu0 %v3047_v6  ;;  %2580 = vmatprep.mubr.msk.f32.mxu0 %vm2939_vm2, %v2937_v8 }
 0xac8   :  { %2574 = vmatprep.subr.mxu0 %v2937_v8 }
 0xac9   :  { %2575 = vmatpush3.msra.mxu0 %v3059_v9 }
 0xaca   :  { %2576 = vmatprep.subr.mxu0 %v2937_v8 }
 0xacb   :  { %2577 = vmatpush3.msra.mxu0 %v3070_v11 }
 0xacc   :  { %2578 = vmatprep.subr.mxu0 %v2937_v8 }
 0xacd   :  { %2579 = vmatpush3.msra.mxu0 %v3080_v12  ;;  %v1101_v40 = vld [vmem:[#allocation2 + $0x18] sm:$0xff] }
 0xace   :  { %2594 = vmatprep.subr.mxu0 %v1109_v26 }
 0xb86   :  { %v747_v55 = vpop.f32.mrf.mxu0 }
 0xb87   :  { %v758_v56 = vadd.f32 %v747_v55, %v3120_v25  ;;  %v751_v59 = vadd.f32 %v747_v55, %v678_v58 }
 0xb88   :  { %v2560_v57 = vpop.f32.mrf.mxu0 }
 0xb89   :  { %760 = vrot.lane.b32.xlu1 %v758_v56, %s2938_s4  ;;  %v2336_v60 = vmul.f32 -1.442695, %v751_v59  ;;  %v888_v59 = vld [vmem:[#allocation3 + $0x30] sm:$0xff] }
 0xb8b   :  { %2758 = vpow2.f32 %v2336_v60 }
 0xb98   :  { %v2759_v61 = vpop.eup %2758 }
 0xb99   :  { %v755_v62 = vadd.f32 1.0, %v2759_v61 }
 0xb9b   :  { %2760 = vrcp.f32 %v755_v62 }
 0xba8   :  { %v2761_v63 = vpop.eup %2760 }
 0xba9   :  { %v770_v5 = vsub.f32 1.0, %v2761_v63  ;;  %v776_v10 = vmul.f32 %v2761_v63, %v672_v53 }
 0xbfb   :  { %v761_v0 = vpop.permute.xlu1 %760 }
 0xbfc   :  { %v763_v1 = vmul.f32 %v2761_v63, %v761_v0 }
 0xbfe   :  { %765 = vrot.lane.b32.xlu0 %v763_v1, %s2938_s4 }
 0xc70   :  { %v766_v2 = vpop.permute.xlu0 %765 }
 0xc71   :  { %v768_v3 = vadd.f32 %v766_v2, %v678_v58 }
 0xc73   :  { %2762 = vtanh.f32 %v768_v3 }
 0xc80   :  { %v2763_v4 = vpop.eup %2762 }
 0xc81   :  { %772 = vrot.lane.b32.xlu1 %v2763_v4, %s2940_s3 }
 0xcf3   :  { %v773_v7 = vpop.permute.xlu1 %772 }
 0xcf4   :  { %v775_v14 = vmul.f32 %v773_v7, %v770_v5  ;;  %v3273_v7 = vld [vmem:[#allocation7 + $0x18] sm:$0xff] }
 0xcf6   :  { %v777_v13 = vadd.f32 %v776_v10, %v775_v14  ;;  %v3276_v10 = vld [vmem:[#allocation7 + $0x10] sm:$0xff]  ;;  %v3280_v14 = vld [vmem:[#allocation7 + $0x8] sm:$0xff] }
 0xcf8   :  { %779 = vrot.lane.b32.xlu0 %v777_v13, %s2940_s3 }
 0xd6a   :  { %v780_v15 = vpop.permute.xlu0 %779 }
 0xd6b   :  { %782 = vst.msk [vmem:[#allocation2 + $0x20] sm:$0xff] %vm254_vm4, %v780_v15  ;;  %2570 = vmatmul.mubr.msk.f32.vlgmr.msra.gmra.mxu1 %vm254_vm4, %v780_v15 }
 0xd6c   :  { %2584 = vmatpush3.msra.mxu1 %v3047_v6  ;;  %2591 = vmatprep.mubr.msk.f32.mxu1 %vm2939_vm2, %v2937_v8 }
 0xd6d   :  { %2585 = vmatprep.subr.mxu1 %v2937_v8 }
 0xd6e   :  { %2586 = vmatpush3.msra.mxu1 %v3059_v9 }
 0xd6f   :  { %2587 = vmatprep.subr.mxu1 %v2937_v8 }
 0xd70   :  { %2588 = vmatpush3.msra.mxu1 %v3070_v11 }
 0xd71   :  { %2589 = vmatprep.subr.mxu1 %v2937_v8 }
 0xd72   :  { %2590 = vmatpush3.msra.mxu1 %v3080_v12  ;;  %v1102_v41 = vld [vmem:[#allocation2 + $0x20] sm:$0xff] }
 0xd73   :  { %2614 = vmatprep.subr.mxu1 %v2937_v8 }
 0xe2b   :  { %v852_v16 = vpop.f32.mrf.mxu1 }
 0xe2c   :  { %v863_v6 = vadd.f32 %v852_v16, %v3120_v25  ;;  %v856_v19 = vadd.f32 %v852_v16, %v783_v18 }
 0xe2d   :  { %v2571_v17 = vpop.f32.mrf.mxu1 }
 0xe2e   :  { %865 = vrot.lane.b32.xlu1 %v863_v6, %s2938_s4  ;;  %v2338_v20 = vmul.f32 -1.442695, %v856_v19  ;;  %v2352_v6 = vld [vmem:[%s3506_s8] ss:$0 sm:$0xff] }
 0xe30   :  { %2764 = vpow2.f32 %v2338_v20 }
 0xe3d   :  { %v2765_v9 = vpop.eup %2764 }
 0xe3e   :  { %v860_v21 = vadd.f32 1.0, %v2765_v9 }
 0xe40   :  { %2766 = vrcp.f32 %v860_v21 }
 0xe4d   :  { %v2767_v11 = vpop.eup %2766 }
 0xe4e   :  { %v875_v28 = vsub.f32 1.0, %v2767_v11  ;;  %v881_v30 = vmul.f32 %v2767_v11, %v777_v13  ;;  %v3284_v13 = vld [vmem:[#allocation7] sm:$0xff] }
 0xea0   :  { %v866_v22 = vpop.permute.xlu1 %865 }
 0xea1   :  { %v868_v23 = vmul.f32 %v2767_v11, %v866_v22 }
 0xea3   :  { %870 = vrot.lane.b32.xlu0 %v868_v23, %s2938_s4 }
 0xf15   :  { %v871_v12 = vpop.permute.xlu0 %870 }
 0xf16   :  { %v873_v24 = vadd.f32 %v871_v12, %v783_v18 }
 0xf18   :  { %2768 = vtanh.f32 %v873_v24 }
 0xf25   :  { %v2769_v27 = vpop.eup %2768 }
 0xf26   :  { %877 = vrot.lane.b32.xlu1 %v2769_v27, %s2940_s3 }
 0xf98   :  { %v878_v29 = vpop.permute.xlu1 %877 }
 0xf99   :  { %v880_v31 = vmul.f32 %v878_v29, %v875_v28 }
 0xf9b   :  { %v3230_v32 = vadd.f32 %v881_v30, %v880_v31 }
 0xf9d   :  { %884 = vrot.lane.b32.xlu0 %v3230_v32, %s2940_s3 }
0x100f   :  { %v885_v33 = vpop.permute.xlu0 %884 }
0x1010   :  { %887 = vst.msk [vmem:[#allocation2 + $0x28] sm:$0xff] %vm254_vm4, %v885_v33  ;;  %2581 = vmatmul.mubr.msk.f32.vlgmr.msra.gmra.mxu0 %vm254_vm4, %v885_v33 }
0x1011   :  { %2595 = vmatpush3.msra.mxu0 %v1109_v26  ;;  %2602 = vmatprep.mubr.msk.f32.mxu0 %vm254_vm4, %v1098_v35 }
0x1012   :  { %2596 = vmatprep.subr.mxu0 %v1108_v34 }
0x1013   :  { %2597 = vmatpush3.msra.mxu0 %v1108_v34 }
0x1014   :  { %2598 = vmatprep.subr.mxu0 %v1107_v36 }
0x1015   :  { %2599 = vmatpush3.msra.mxu0 %v1107_v36 }
0x1016   :  { %2600 = vmatprep.subr.mxu0 %v1106_v37 }
0x1017   :  { %2601 = vmatpush3.msra.mxu0 %v1106_v37  ;;  %v1103_v42 = vld [vmem:[#allocation2 + $0x28] sm:$0xff] }
0x1018   :  { %2603 = vmatmul.mubr.msk.f32.vlgmr.msra.gmra.mxu0 %vm254_vm4, %v1099_v38  ;;  %2636 = vmatprep.subr.mxu0 %v2937_v8  ;;  %v993_v38 = vld [vmem:[#allocation3 + $0x38] sm:$0xff] }
0x1019   :  { %2605 = vmatprep.mubr.msk.f32.mxu0 %vm254_vm4, %v1100_v39  ;;  %2637 = vmatpush3.msra.mxu0 %v3273_v7 }
0x101a   :  { %2638 = vmatprep.subr.mxu0 %v2937_v8 }
0x101b   :  { %2639 = vmatpush3.msra.mxu0 %v3276_v10 }
0x101c   :  { %2606 = vmatmul.mubr.msk.f32.gmra.mxu0 %vm254_vm4, %v1101_v40  ;;  %2640 = vmatprep.subr.mxu0 %v2937_v8 }
0x101d   :  { %2608 = vmatprep.mubr.msk.f32.mxu0 %vm254_vm4, %v1102_v41  ;;  %2641 = vmatpush3.msra.mxu0 %v3280_v14 }
0x101e   :  { %2642 = vmatprep.subr.mxu0 %v2937_v8 }
0x101f   :  { %2643 = vmatpush3.msra.mxu0 %v3284_v13 }
0x1020   :  { %2609 = vmatmul.mubr.msk.f32.gmra.mxu0 %vm254_vm4, %v1103_v42  ;;  %2658 = vmatprep.subr.mxu0 %v2937_v8 }
0x10d0   :  { %v957_v43 = vpop.f32.mrf.mxu0 }
0x10d1   :  { %v968_v44 = vadd.f32 %v957_v43, %v3120_v25  ;;  %v961_v60 = vadd.f32 %v957_v43, %v888_v59 }
0x10d2   :  { %v2582_v45 = vpop.f32.mrf.mxu0 }
0x10d3   :  { %970 = vrot.lane.b32.xlu1 %v968_v44, %s2938_s4  ;;  %v2340_v61 = vmul.f32 -1.442695, %v961_v60 }
0x10d5   :  { %2770 = vpow2.f32 %v2340_v61 }
0x10d8   :  { %v2604_v47 = vpop.f32.mrf.mxu0 }
0x10d9   :  { %v1213_v48 = vadd.f32 %v2604_v47, %v3257_v46 }
0x10da   :  { %v1207_v49 = vpop.f32.mrf.mxu0 }
0x10db   :  { %1247 = vst.msk [vmem:[#allocation3 + $0x8] sm:$0xff] %vm234_vm3, %v1213_v48  ;;  %v1208_v50 = vadd.f32 %v3257_v46, %v1207_v49 }
0x10dc   :  { %v2607_v51 = vpop.f32.mrf.mxu0 }
0x10dd   :  { %1246 = vst.msk [vmem:[#allocation3] sm:$0xff] %vm234_vm3, %v1208_v50  ;;  %v1223_v52 = vadd.f32 %v2607_v51, %v3257_v46 }
0x10de   :  { %v1217_v53 = vpop.f32.mrf.mxu0 }
0x10df   :  { %1249 = vst.msk [vmem:[#allocation3 + $0x18] sm:$0xff] %vm234_vm3, %v1223_v52  ;;  %v1218_v54 = vadd.f32 %v3257_v46, %v1217_v53 }
0x10e0   :  { %v2610_v55 = vpop.f32.mrf.mxu0 }
0x10e1   :  { %1248 = vst.msk [vmem:[#allocation3 + $0x10] sm:$0xff] %vm234_vm3, %v1218_v54  ;;  %v1233_v56 = vadd.f32 %v2610_v55, %v3257_v46 }
0x10e2   :  { %v1227_v57 = vpop.f32.mrf.mxu0  ;;  %v2771_v62 = vpop.eup %2770 }
0x10e3   :  { %1251 = vst.msk [vmem:[#allocation3 + $0x28] sm:$0xff] %vm234_vm3, %v1233_v56  ;;  %v1228_v58 = vadd.f32 %v3257_v46, %v1227_v57  ;;  %v965_v63 = vadd.f32 1.0, %v2771_v62 }
0x10e4   :  { %v1264_v26 = vld [vmem:[#allocation3] sm:$0xff] }
0x10e5   :  { %1250 = vst.msk [vmem:[#allocation3 + $0x20] sm:$0xff] %vm234_vm3, %v1228_v58  ;;  %2772 = vrcp.f32 %v965_v63 }
0x10f2   :  { %v2773_v0 = vpop.eup %2772 }
0x10f3   :  { %v980_v15 = vsub.f32 1.0, %v2773_v0  ;;  %v986_v17 = vmul.f32 %v2773_v0, %v3230_v32 }
0x1145   :  { %v971_v1 = vpop.permute.xlu1 %970 }
0x1146   :  { %v973_v2 = vmul.f32 %v2773_v0, %v971_v1  ;;  %v1370_v1 = vld [vmem:[#allocation3 + $0x8] sm:$0xff] }
0x1148   :  { %975 = vrot.lane.b32.xlu0 %v973_v2, %s2938_s4 }
0x11ba   :  { %v976_v3 = vpop.permute.xlu0 %975 }
0x11bb   :  { %v978_v4 = vadd.f32 %v976_v3, %v888_v59 }
0x11bd   :  { %2774 = vtanh.f32 %v978_v4 }
0x11ca   :  { %v2775_v5 = vpop.eup %2774 }
0x11cb   :  { %982 = vrot.lane.b32.xlu1 %v2775_v5, %s2940_s3 }
0x11cf   :  { %1342 = vrot.lane.b32.xlu1 %v2352_v6, %s2938_s4 }
0x123d   :  { %v983_v16 = vpop.permute.xlu1 %982 }
0x123e   :  { %v985_v18 = vmul.f32 %v983_v16, %v980_v15 }
0x1240   :  { %v3294_v19 = vadd.f32 %v986_v17, %v985_v18 }
0x1241   :  { %v3322_v22 = vpop.permute.xlu1 %1342 }
0x1242   :  { %989 = vrot.lane.b32.xlu0 %v3294_v19, %s2940_s3 }
0x12b4   :  { %v990_v20 = vpop.permute.xlu0 %989 }
0x12b5   :  { %992 = vst.msk [vmem:[#allocation2 + $0x30] sm:$0xff] %vm254_vm4, %v990_v20  ;;  %2592 = vmatmul.mubr.msk.f32.vlgmr.msra.gmra.mxu1 %vm254_vm4, %v990_v20 }
0x12b6   :  { %2615 = vmatpush3.msra.mxu1 %v3273_v7  ;;  %2622 = vmatprep.mubr.msk.f32.mxu1 %vm2939_vm2, %v2937_v8 }
0x12b7   :  { %2616 = vmatprep.subr.mxu1 %v2937_v8 }
0x12b8   :  { %2617 = vmatpush3.msra.mxu1 %v3276_v10 }
0x12b9   :  { %2618 = vmatprep.subr.mxu1 %v2937_v8 }
0x12ba   :  { %2619 = vmatpush3.msra.mxu1 %v3280_v14 }
0x12bb   :  { %2620 = vmatprep.subr.mxu1 %v2937_v8 }
0x12bc   :  { %2621 = vmatpush3.msra.mxu1 %v3284_v13  ;;  %v1104_v9 = vld [vmem:[#allocation2 + $0x30] sm:$0xff] }
0x12bd   :  { %2623 = vmatmul.mubr.f32.vlgmr.msra.gmra.mxu1 %v2937_v8  ;;  %2611 = vmatprep.mubr.msk.f32.mxu0 %vm254_vm4, %v1104_v9 }
0x12be   :  { %2625 = vmatprep.subr.mxu1 %v2937_v8  ;;  %2633 = vmatprep.mubr.msk.f32.mxu1 %vm2939_vm2, %v2937_v8 }
0x12bf   :  { %2626 = vmatpush3.msra.mxu1 %v3273_v7 }
0x12c0   :  { %2627 = vmatprep.subr.mxu1 %v2937_v8 }
0x12c1   :  { %2628 = vmatpush3.msra.mxu1 %v3276_v10 }
0x12c2   :  { %2629 = vmatprep.subr.mxu1 %v2937_v8 }
0x12c3   :  { %2630 = vmatpush3.msra.mxu1 %v3280_v14 }
0x12c4   :  { %2631 = vmatprep.subr.mxu1 %v2937_v8 }
0x12c5   :  { %2632 = vmatpush3.msra.mxu1 %v3284_v13 }
0x12c6   :  { %2647 = vmatprep.subr.mxu1 %v2937_v8 }
0x1375   :  { %v1062_v21 = vpop.f32.mrf.mxu1 }
0x1376   :  { %v1073_v37 = vadd.f32 %v1062_v21, %v3120_v25  ;;  %v1066_v39 = vadd.f32 %v1062_v21, %v993_v38 }
0x1377   :  { %v2593_v11 = vpop.f32.mrf.mxu1 }
0x1378   :  { %v2342_v40 = vmul.f32 -1.442695, %v1066_v39 }
0x137d   :  { %v1331_v23 = vpop.f32.mrf.mxu1 }
0x137e   :  { %v1345_v12 = vadd.f32 %v3322_v22, %v1331_v23  ;;  %v1335_v27 = vadd.f32 %v1331_v23, %v1264_v26 }
0x137f   :  { %v2624_v24 = vpop.f32.mrf.mxu1 }
0x1380   :  { %1347 = vrot.lane.b32.xlu0 %v1345_v12, %s2938_s4  ;;  %v2353_v28 = vmul.f32 -1.442695, %v1335_v27 }
0x1382   :  { %2776 = vpow2.f32 %v2353_v28 }
0x138f   :  { %v2777_v29 = vpop.eup %2776 }
0x1390   :  { %v1339_v30 = vadd.f32 1.0, %v2777_v29 }
0x1392   :  { %2778 = vrcp.f32 %v1339_v30 }
0x139f   :  { %v2779_v31 = vpop.eup %2778 }
0x13a0   :  { %v1357_v43 = vsub.f32 1.0, %v2779_v31  ;;  %v1363_v45 = vmul.f32 0.0, %v2779_v31 }
0x13f2   :  { %v1348_v32 = vpop.permute.xlu0 %1347 }
0x13f3   :  { %v1350_v33 = vmul.f32 %v2779_v31, %v1348_v32  ;;  %v1475_v31 = vld [vmem:[#allocation3 + $0x10] sm:$0xff] }
0x13f5   :  { %1352 = vrot.lane.b32.xlu1 %v1350_v33, %s2938_s4 }
0x1467   :  { %v1353_v34 = vpop.permute.xlu1 %1352 }
0x1468   :  { %v1355_v35 = vadd.f32 %v1353_v34, %v1264_v26 }
0x146a   :  { %2780 = vtanh.f32 %v1355_v35 }
0x146b   :  { %2782 = vpow2.f32 %v2342_v40 }
0x1477   :  { %v2781_v36 = vpop.eup %2780 }
0x1478   :  { %1359 = vrot.lane.b32.xlu0 %v2781_v36, %s2940_s3  ;;  %v2783_v41 = vpop.eup %2782 }
0x1479   :  { %v1070_v42 = vadd.f32 1.0, %v2783_v41 }
0x147b   :  { %2784 = vrcp.f32 %v1070_v42 }
0x147c   :  { %1075 = vrot.lane.b32.xlu0 %v1073_v37, %s2938_s4 }
0x1488   :  { %v2785_v49 = vpop.eup %2784 }
0x1489   :  { %v1085_v55 = vsub.f32 1.0, %v2785_v49  ;;  %v1091_v57 = vmul.f32 %v2785_v49, %v3294_v19 }
0x14ea   :  { %v1360_v44 = vpop.permute.xlu0 %1359 }
0x14eb   :  { %v1362_v47 = vmul.f32 %v1360_v44, %v1357_v43 }
0x14ed   :  { %v1364_v48 = vadd.f32 %v1363_v45, %v1362_v47 }
0x14ee   :  { %v1076_v50 = vpop.permute.xlu0 %1075 }
0x14ef   :  { %v1078_v51 = vmul.f32 %v2785_v49, %v1076_v50  ;;  %1366 = vrot.lane.b32.xlu1 %v1364_v48, %s2940_s3 }
0x14f1   :  { %1080 = vrot.lane.b32.xlu0 %v1078_v51, %s2938_s4 }
0x1561   :  { %v1367_v25 = vpop.permute.xlu1 %1366 }
0x1562   :  { %1369 = vst.msk [vmem:[#allocation2] sm:$0xff] %vm254_vm4, %v1367_v25  ;;  %2634 = vmatmul.mubr.msk.f32.vlgmr.msra.gmra.mxu1 %vm254_vm4, %v1367_v25  ;;  %v1580_v25 = vld [vmem:[#allocation3 + $0x18] sm:$0xff] }
0x1563   :  { %v1081_v52 = vpop.permute.xlu0 %1080  ;;  %2648 = vmatpush3.msra.mxu1 %v3273_v7  ;;  %2655 = vmatprep.mubr.msk.f32.mxu1 %vm2939_vm2, %v2937_v8 }
0x1564   :  { %v1083_v53 = vadd.f32 %v1081_v52, %v993_v38  ;;  %2649 = vmatprep.subr.mxu1 %v2937_v8 }
0x1565   :  { %2650 = vmatpush3.msra.mxu1 %v3276_v10 }
0x1566   :  { %2786 = vtanh.f32 %v1083_v53  ;;  %2651 = vmatprep.subr.mxu1 %v2937_v8 }
0x1567   :  { %2652 = vmatpush3.msra.mxu1 %v3280_v14 }
0x1568   :  { %2653 = vmatprep.subr.mxu1 %v2937_v8 }
0x1569   :  { %2654 = vmatpush3.msra.mxu1 %v3284_v13 }
0x156a   :  { %2669 = vmatprep.subr.mxu1 %v2937_v8 }
0x1573   :  { %v2787_v54 = vpop.eup %2786 }
0x1574   :  { %1087 = vrot.lane.b32.xlu0 %v2787_v54, %s2940_s3 }
0x15e6   :  { %v1088_v56 = vpop.permute.xlu0 %1087 }
0x15e7   :  { %v1090_v58 = vmul.f32 %v1088_v56, %v1085_v55 }
0x15e9   :  { %v1092_v59 = vadd.f32 %v1091_v57, %v1090_v58 }
0x15eb   :  { %1094 = vrot.lane.b32.xlu0 %v1092_v59, %s2940_s3 }
0x1622   :  { %v1439_v60 = vpop.f32.mrf.mxu1 }
0x1623   :  { %v1450_v61 = vadd.f32 %v1439_v60, %v3322_v22  ;;  %v1443_v2 = vadd.f32 %v1439_v60, %v1370_v1 }
0x1624   :  { %v2635_v62 = vpop.f32.mrf.mxu1 }
0x1625   :  { %1452 = vrot.lane.b32.xlu1 %v1450_v61, %s2938_s4  ;;  %v2355_v3 = vmul.f32 -1.442695, %v1443_v2 }
0x1627   :  { %2788 = vpow2.f32 %v2355_v3 }
0x1634   :  { %v2789_v4 = vpop.eup %2788 }
0x1635   :  { %v1447_v5 = vadd.f32 1.0, %v2789_v4 }
0x1637   :  { %2790 = vrcp.f32 %v1447_v5 }
0x1644   :  { %v2791_v15 = vpop.eup %2790 }
0x1645   :  { %v1462_v23 = vsub.f32 1.0, %v2791_v15  ;;  %v1468_v24 = vmul.f32 %v2791_v15, %v1364_v48 }
0x165d   :  { %v1095_v63 = vpop.permute.xlu0 %1094 }
0x165e   :  { %1097 = vst.msk [vmem:[#allocation2 + $0x38] sm:$0xff] %vm254_vm4, %v1095_v63 }
0x1665   :  { %v1105_v0 = vld [vmem:[#allocation2 + $0x38] sm:$0xff] }
0x1666   :  { %2612 = vmatmul.mubr.msk.f32.gmra.mxu0 %vm254_vm4, %v1105_v0 }
0x1667   :  { %2644 = vmatprep.mubr.msk.f32.mxu0 %vm2939_vm2, %v2937_v8 }
0x1697   :  { %v1453_v16 = vpop.permute.xlu1 %1452 }
0x1698   :  { %v1455_v6 = vmul.f32 %v2791_v15, %v1453_v16  ;;  %v1685_v16 = vld [vmem:[#allocation3 + $0x20] sm:$0xff] }
0x169a   :  { %1457 = vrot.lane.b32.xlu1 %v1455_v6, %s2938_s4 }
0x170c   :  { %v1458_v17 = vpop.permute.xlu1 %1457 }
0x170d   :  { %v1460_v18 = vadd.f32 %v1458_v17, %v1370_v1 }
0x170f   :  { %2792 = vtanh.f32 %v1460_v18 }
0x171c   :  { %v2793_v19 = vpop.eup %2792 }
0x171d   :  { %1464 = vrot.lane.b32.xlu1 %v2793_v19, %s2940_s3 }
0x1726   :  { %v2613_v20 = vpop.f32.mrf.mxu0 }
0x1727   :  { %v1243_v9 = vadd.f32 %v2613_v20, %v3257_v46 }
0x1728   :  { %v1237_v21 = vpop.f32.mrf.mxu0 }
0x1729   :  { %1253 = vst.msk [vmem:[#allocation3 + $0x38] sm:$0xff] %vm234_vm3, %v1243_v9  ;;  %v1238_v11 = vadd.f32 %v3257_v46, %v1237_v21 }
0x172b   :  { %1252 = vst.msk [vmem:[#allocation3 + $0x30] sm:$0xff] %vm234_vm3, %v1238_v11 }
0x178f   :  { %v1465_v12 = vpop.permute.xlu1 %1464 }
0x1790   :  { %v1467_v26 = vmul.f32 %v1465_v12, %v1462_v23 }
0x1792   :  { %v1469_v27 = vadd.f32 %v1468_v24, %v1467_v26 }
0x1794   :  { %1471 = vrot.lane.b32.xlu1 %v1469_v27, %s2940_s3 }
0x1806   :  { %v1472_v28 = vpop.permute.xlu1 %1471 }
0x1807   :  { %1474 = vst.msk [vmem:[#allocation2 + $0x8] sm:$0xff] %vm254_vm4, %v1472_v28  ;;  %2645 = vmatmul.mubr.msk.f32.vlgmr.msra.gmra.mxu0 %vm254_vm4, %v1472_v28 }
0x1808   :  { %2659 = vmatpush3.msra.mxu0 %v3273_v7  ;;  %2666 = vmatprep.mubr.msk.f32.mxu0 %vm2939_vm2, %v2937_v8 }
0x1809   :  { %2660 = vmatprep.subr.mxu0 %v2937_v8 }
0x180a   :  { %2661 = vmatpush3.msra.mxu0 %v3276_v10 }
0x180b   :  { %2662 = vmatprep.subr.mxu0 %v2937_v8 }
0x180c   :  { %2663 = vmatpush3.msra.mxu0 %v3280_v14 }
0x180d   :  { %2664 = vmatprep.subr.mxu0 %v2937_v8 }
0x180e   :  { %2665 = vmatpush3.msra.mxu0 %v3284_v13 }
0x180f   :  { %2680 = vmatprep.subr.mxu0 %v2937_v8 }
0x18c7   :  { %v1544_v46 = vpop.f32.mrf.mxu0 }
0x18c8   :  { %v1555_v29 = vadd.f32 %v1544_v46, %v3322_v22  ;;  %v1548_v32 = vadd.f32 %v1544_v46, %v1475_v31 }
0x18c9   :  { %v2646_v30 = vpop.f32.mrf.mxu0 }
0x18ca   :  { %1557 = vrot.lane.b32.xlu0 %v1555_v29, %s2938_s4  ;;  %v2357_v33 = vmul.f32 -1.442695, %v1548_v32 }
0x18cc   :  { %2794 = vpow2.f32 %v2357_v33 }
0x18d9   :  { %v2795_v34 = vpop.eup %2794 }
0x18da   :  { %v1552_v35 = vadd.f32 1.0, %v2795_v34 }
0x18dc   :  { %2796 = vrcp.f32 %v1552_v35 }
0x18e9   :  { %v2797_v36 = vpop.eup %2796 }
0x18ea   :  { %v1567_v42 = vsub.f32 1.0, %v2797_v36  ;;  %v1573_v44 = vmul.f32 %v2797_v36, %v1469_v27 }
0x193c   :  { %v1558_v37 = vpop.permute.xlu0 %1557 }
0x193d   :  { %v1560_v38 = vmul.f32 %v2797_v36, %v1558_v37 }
0x193f   :  { %1562 = vrot.lane.b32.xlu1 %v1560_v38, %s2938_s4  ;;  %v2116_v38 = vld [vmem:[#allocation9 + $0x18] sm:$0xff] }
0x19b1   :  { %v1563_v39 = vpop.permute.xlu1 %1562 }
0x19b2   :  { %v1565_v40 = vadd.f32 %v1563_v39, %v1475_v31 }
0x19b4   :  { %2798 = vtanh.f32 %v1565_v40 }
0x19c1   :  { %v2799_v41 = vpop.eup %2798 }
0x19c2   :  { %1569 = vrot.lane.b32.xlu0 %v2799_v41, %s2940_s3 }
0x1a34   :  { %v1570_v43 = vpop.permute.xlu0 %1569 }
0x1a35   :  { %v1572_v45 = vmul.f32 %v1570_v43, %v1567_v42 }
0x1a37   :  { %v1574_v47 = vadd.f32 %v1573_v44, %v1572_v45 }
0x1a39   :  { %1576 = vrot.lane.b32.xlu1 %v1574_v47, %s2940_s3 }
0x1aab   :  { %v1577_v48 = vpop.permute.xlu1 %1576 }
0x1aac   :  { %1579 = vst.msk [vmem:[#allocation2 + $0x10] sm:$0xff] %vm254_vm4, %v1577_v48  ;;  %2656 = vmatmul.mubr.msk.f32.vlgmr.msra.gmra.mxu1 %vm254_vm4, %v1577_v48  ;;  %v2105_v48 = vld [vmem:[#allocation2] sm:$0xff] }
0x1aad   :  { %2670 = vmatpush3.msra.mxu1 %v3273_v7  ;;  %2677 = vmatprep.mubr.msk.f32.mxu1 %vm2939_vm2, %v2937_v8 }
0x1aae   :  { %2671 = vmatprep.subr.mxu1 %v2937_v8 }
0x1aaf   :  { %2672 = vmatpush3.msra.mxu1 %v3276_v10 }
0x1ab0   :  { %2673 = vmatprep.subr.mxu1 %v2937_v8 }
0x1ab1   :  { %2674 = vmatpush3.msra.mxu1 %v3280_v14 }
0x1ab2   :  { %2675 = vmatprep.subr.mxu1 %v2937_v8 }
0x1ab3   :  { %2676 = vmatpush3.msra.mxu1 %v3284_v13 }
0x1ab4   :  { %2691 = vmatprep.subr.mxu1 %v2937_v8 }
0x1b6c   :  { %v1649_v49 = vpop.f32.mrf.mxu1 }
0x1b6d   :  { %v1660_v50 = vadd.f32 %v1649_v49, %v3322_v22  ;;  %v1653_v52 = vadd.f32 %v1649_v49, %v1580_v25  ;;  %v2114_v49 = vld [vmem:[#allocation9 + $0x8] sm:$0xff] }
0x1b6e   :  { %v2657_v51 = vpop.f32.mrf.mxu1 }
0x1b6f   :  { %1662 = vrot.lane.b32.xlu0 %v1660_v50, %s2938_s4  ;;  %v2359_v53 = vmul.f32 -1.442695, %v1653_v52  ;;  %v2113_v50 = vld [vmem:[#allocation9] sm:$0xff] }
0x1b70   :  { %v2106_v51 = vld [vmem:[#allocation2 + $0x8] sm:$0xff] }
0x1b71   :  { %2800 = vpow2.f32 %v2359_v53 }
0x1b7e   :  { %v2801_v54 = vpop.eup %2800 }
0x1b7f   :  { %v1657_v55 = vadd.f32 1.0, %v2801_v54 }
0x1b81   :  { %2802 = vrcp.f32 %v1657_v55 }
0x1b8e   :  { %v2803_v56 = vpop.eup %2802 }
0x1b8f   :  { %v1672_v62 = vsub.f32 1.0, %v2803_v56  ;;  %v1678_v0 = vmul.f32 %v2803_v56, %v1574_v47  ;;  %v2115_v47 = vld [vmem:[#allocation9 + $0x10] sm:$0xff] }
0x1be1   :  { %v1663_v57 = vpop.permute.xlu0 %1662 }
0x1be2   :  { %v1665_v58 = vmul.f32 %v2803_v56, %v1663_v57 }
0x1be4   :  { %1667 = vrot.lane.b32.xlu1 %v1665_v58, %s2938_s4  ;;  %v3442_v58 = vld [vmem:[%s3508_s10] ss:$0 sm:$0xff] }
0x1c56   :  { %v1668_v59 = vpop.permute.xlu1 %1667 }
0x1c57   :  { %v1670_v60 = vadd.f32 %v1668_v59, %v1580_v25  ;;  %v2107_v25 = vld [vmem:[#allocation2 + $0x10] sm:$0xff] }
0x1c59   :  { %2804 = vtanh.f32 %v1670_v60 }
0x1c66   :  { %v2805_v61 = vpop.eup %2804 }
0x1c67   :  { %1674 = vrot.lane.b32.xlu0 %v2805_v61, %s2940_s3 }
0x1cd9   :  { %v1675_v63 = vpop.permute.xlu0 %1674 }
0x1cda   :  { %v1677_v1 = vmul.f32 %v1675_v63, %v1672_v62 }
0x1cdc   :  { %v1679_v2 = vadd.f32 %v1678_v0, %v1677_v1 }
0x1cde   :  { %1681 = vrot.lane.b32.xlu1 %v1679_v2, %s2940_s3 }
0x1d50   :  { %v1682_v3 = vpop.permute.xlu1 %1681 }
0x1d51   :  { %1684 = vst.msk [vmem:[#allocation2 + $0x18] sm:$0xff] %vm254_vm4, %v1682_v3  ;;  %2667 = vmatmul.mubr.msk.f32.vlgmr.msra.gmra.mxu0 %vm254_vm4, %v1682_v3 }
0x1d52   :  { %2681 = vmatpush3.msra.mxu0 %v3273_v7  ;;  %2688 = vmatprep.mubr.msk.f32.mxu0 %vm2939_vm2, %v2937_v8 }
0x1d53   :  { %2682 = vmatprep.subr.mxu0 %v2937_v8 }
0x1d54   :  { %2683 = vmatpush3.msra.mxu0 %v3276_v10 }
0x1d55   :  { %2684 = vmatprep.subr.mxu0 %v2937_v8 }
0x1d56   :  { %2685 = vmatpush3.msra.mxu0 %v3280_v14 }
0x1d57   :  { %2686 = vmatprep.subr.mxu0 %v2937_v8 }
0x1d58   :  { %2687 = vmatpush3.msra.mxu0 %v3284_v13  ;;  %v2108_v52 = vld [vmem:[#allocation2 + $0x18] sm:$0xff] }
0x1d59   :  { %2702 = vmatprep.subr.mxu0 %v2116_v38 }
0x1e11   :  { %v1754_v4 = vpop.f32.mrf.mxu0 }
0x1e12   :  { %v1765_v5 = vadd.f32 %v1754_v4, %v3322_v22  ;;  %v1758_v6 = vadd.f32 %v1754_v4, %v1685_v16 }
0x1e13   :  { %v2668_v15 = vpop.f32.mrf.mxu0 }
0x1e14   :  { %1767 = vrot.lane.b32.xlu0 %v1765_v5, %s2938_s4  ;;  %v2361_v17 = vmul.f32 -1.442695, %v1758_v6 }
0x1e16   :  { %2806 = vpow2.f32 %v2361_v17  ;;  %v3458_v17 = vld [vmem:[%s3510_s12] ss:$0 sm:$0xff] }
0x1e23   :  { %v2807_v18 = vpop.eup %2806 }
0x1e24   :  { %v1762_v19 = vadd.f32 1.0, %v2807_v18 }
0x1e26   :  { %2808 = vrcp.f32 %v1762_v19 }
0x1e33   :  { %v2809_v20 = vpop.eup %2808 }
0x1e34   :  { %v1777_v24 = vsub.f32 1.0, %v2809_v20  ;;  %v1783_v27 = vmul.f32 %v2809_v20, %v1679_v2 }
0x1e86   :  { %v1768_v9 = vpop.permute.xlu0 %1767 }
0x1e87   :  { %v1770_v21 = vmul.f32 %v2809_v20, %v1768_v9 }
0x1e89   :  { %1772 = vrot.lane.b32.xlu1 %v1770_v21, %s2938_s4 }
0x1efb   :  { %v1773_v11 = vpop.permute.xlu1 %1772 }
0x1efc   :  { %v1775_v23 = vadd.f32 %v1773_v11, %v1685_v16  ;;  %v3453_v16 = vld [vmem:[%s3509_s11] ss:$0 sm:$0xff]  ;;  %s2941_s11 = smov [#allocation10]  }
0x1efd   :  { %s2304_s12 = sshll.u32 %s2941_s11, 4  ;;  %s2305_s12 = int_to_ptr.vmem [resolvable:$true] %s2304_s12 }
0x1efe   :  { %2810 = vtanh.f32 %v1775_v23  ;;  %p2911_p2 = scmp.lt.s32.totalorder %s2305_s12, %s2305_s12 }
0x1f0b   :  { %v2811_v12 = vpop.eup %2810 }
0x1f0c   :  { %1779 = vrot.lane.b32.xlu0 %v2811_v12, %s2940_s3 }
0x1f7e   :  { %v1780_v26 = vpop.permute.xlu0 %1779 }
0x1f7f   :  { %v1782_v28 = vmul.f32 %v1780_v26, %v1777_v24 }
0x1f81   :  { %v1784_v46 = vadd.f32 %v1783_v27, %v1782_v28 }
0x1f83   :  { %1786 = vrot.lane.b32.xlu1 %v1784_v46, %s2940_s3 }
0x1ff5   :  { %v1787_v29 = vpop.permute.xlu1 %1786 }
0x1ff6   :  { %1789 = vst.msk [vmem:[#allocation2 + $0x20] sm:$0xff] %vm254_vm4, %v1787_v29  ;;  %2678 = vmatmul.mubr.msk.f32.vlgmr.msra.gmra.mxu1 %vm254_vm4, %v1787_v29 }
0x1ff7   :  { %2692 = vmatpush3.msra.mxu1 %v3273_v7  ;;  %2699 = vmatprep.mubr.msk.f32.mxu1 %vm2939_vm2, %v2937_v8  ;;  %v1790_v7 = vld [vmem:[#allocation3 + $0x28] sm:$0xff] }
0x1ff8   :  { %2693 = vmatprep.subr.mxu1 %v2937_v8 }
0x1ff9   :  { %2694 = vmatpush3.msra.mxu1 %v3276_v10 }
0x1ffa   :  { %2695 = vmatprep.subr.mxu1 %v2937_v8 }
0x1ffb   :  { %2696 = vmatpush3.msra.mxu1 %v3280_v14 }
0x1ffc   :  { %2697 = vmatprep.subr.mxu1 %v2937_v8 }
0x1ffd   :  { %2698 = vmatpush3.msra.mxu1 %v3284_v13  ;;  %v2109_v53 = vld [vmem:[#allocation2 + $0x20] sm:$0xff] }
0x20b6   :  { %v1859_v30 = vpop.f32.mrf.mxu1 }
0x20b7   :  { %v1870_v31 = vadd.f32 %v1859_v30, %v3322_v22  ;;  %v1863_v33 = vadd.f32 %v1859_v30, %v1790_v7 }
0x20b8   :  { %v2679_v32 = vpop.f32.mrf.mxu1 }
0x20b9   :  { %1872 = vrot.lane.b32.xlu0 %v1870_v31, %s2938_s4  ;;  %v2363_v34 = vmul.f32 -1.442695, %v1863_v33 }
0x20bb   :  { %2812 = vpow2.f32 %v2363_v34 }
0x20c8   :  { %v2813_v35 = vpop.eup %2812 }
0x20c9   :  { %v1867_v10 = vadd.f32 1.0, %v2813_v35 }
0x20cb   :  { %2814 = vrcp.f32 %v1867_v10 }
0x20d8   :  { %v2815_v36 = vpop.eup %2814 }
0x20d9   :  { %v1882_v40 = vsub.f32 1.0, %v2815_v36  ;;  %v1888_v42 = vmul.f32 %v2815_v36, %v1784_v46 }
0x212b   :  { %v1873_v37 = vpop.permute.xlu0 %1872 }
0x212c   :  { %v1875_v14 = vmul.f32 %v2815_v36, %v1873_v37 }
0x212e   :  { %1877 = vrot.lane.b32.xlu1 %v1875_v14, %s2938_s4 }
0x21a0   :  { %v1878_v8 = vpop.permute.xlu1 %1877 }
0x21a1   :  { %v1880_v13 = vadd.f32 %v1878_v8, %v1790_v7  ;;  %v1895_v7 = vld [vmem:[#allocation3 + $0x30] sm:$0xff] }
0x21a3   :  { %2816 = vtanh.f32 %v1880_v13 }
0x21b0   :  { %v2817_v39 = vpop.eup %2816 }
0x21b1   :  { %1884 = vrot.lane.b32.xlu0 %v2817_v39, %s2940_s3 }
0x2223   :  { %v1885_v41 = vpop.permute.xlu0 %1884 }
0x2224   :  { %v1887_v43 = vmul.f32 %v1885_v41, %v1882_v40 }
0x2226   :  { %v3425_v44 = vadd.f32 %v1888_v42, %v1887_v43 }
0x2228   :  { %1891 = vrot.lane.b32.xlu1 %v3425_v44, %s2940_s3 }
0x229a   :  { %v1892_v45 = vpop.permute.xlu1 %1891 }
0x229b   :  { %1894 = vst.msk [vmem:[#allocation2 + $0x28] sm:$0xff] %vm254_vm4, %v1892_v45  ;;  %2689 = vmatmul.mubr.msk.f32.vlgmr.msra.gmra.mxu0 %vm254_vm4, %v1892_v45 }
0x229c   :  { %2703 = vmatpush3.msra.mxu0 %v2116_v38  ;;  %2710 = vmatprep.mubr.msk.f32.mxu0 %vm254_vm4, %v2105_v48 }
0x229d   :  { %2704 = vmatprep.subr.mxu0 %v2115_v47 }
0x229e   :  { %2705 = vmatpush3.msra.mxu0 %v2115_v47 }
0x229f   :  { %2706 = vmatprep.subr.mxu0 %v2114_v49 }
0x22a0   :  { %2707 = vmatpush3.msra.mxu0 %v2114_v49 }
0x22a1   :  { %2708 = vmatprep.subr.mxu0 %v2113_v50 }
0x22a2   :  { %2709 = vmatpush3.msra.mxu0 %v2113_v50  ;;  %v2110_v54 = vld [vmem:[#allocation2 + $0x28] sm:$0xff] }
0x22a3   :  { %2711 = vmatmul.mubr.msk.f32.vlgmr.msra.gmra.mxu0 %vm254_vm4, %v2106_v51  ;;  %v2000_v51 = vld [vmem:[#allocation3 + $0x38] sm:$0xff] }
0x22a4   :  { %2713 = vmatprep.mubr.msk.f32.mxu0 %vm254_vm4, %v2107_v25 }
0x22a7   :  { %2714 = vmatmul.mubr.msk.f32.gmra.mxu0 %vm254_vm4, %v2108_v52 }
0x22a8   :  { %2716 = vmatprep.mubr.msk.f32.mxu0 %vm254_vm4, %v2109_v53 }
0x22ab   :  { %2717 = vmatmul.mubr.msk.f32.gmra.mxu0 %vm254_vm4, %v2110_v54 }
0x235b   :  { %v1964_v55 = vpop.f32.mrf.mxu0 }
0x235c   :  { %v1975_v56 = vadd.f32 %v1964_v55, %v3322_v22  ;;  %v1968_v33 = vadd.f32 %v1964_v55, %v1895_v7 }
0x235d   :  { %v2690_v57 = vpop.f32.mrf.mxu0 }
0x235e   :  { %1977 = vrot.lane.b32.xlu0 %v1975_v56, %s2938_s4  ;;  %v2365_v34 = vmul.f32 -1.442695, %v1968_v33 }
0x2363   :  { %v2712_v59 = vpop.f32.mrf.mxu0 }
0x2364   :  { %v2220_v60 = vadd.f32 %v2712_v59, %v3442_v58 }
0x2365   :  { %v2214_v61 = vpop.f32.mrf.mxu0 }
0x2366   :  { %2818 = vtanh.f32 %v2220_v60  ;;  %v2215_v62 = vadd.f32 %v3442_v58, %v2214_v61 }
0x2367   :  { %v2715_v63 = vpop.f32.mrf.mxu0 }
0x2368   :  { %2820 = vtanh.f32 %v2215_v62  ;;  %v2230_v0 = vadd.f32 %v2715_v63, %v3442_v58 }
0x2369   :  { %v2224_v1 = vpop.f32.mrf.mxu0 }
0x236a   :  { %2822 = vtanh.f32 %v2230_v0  ;;  %v2225_v2 = vadd.f32 %v3442_v58, %v2224_v1 }
0x236b   :  { %v2718_v3 = vpop.f32.mrf.mxu0 }
0x236c   :  { %2824 = vtanh.f32 %v2225_v2  ;;  %v2240_v4 = vadd.f32 %v2718_v3, %v3442_v58 }
0x236d   :  { %v2234_v5 = vpop.f32.mrf.mxu0 }
0x236e   :  { %2826 = vtanh.f32 %v2240_v4  ;;  %v2235_v15 = vadd.f32 %v3442_v58, %v2234_v5 }
0x2370   :  { %2828 = vtanh.f32 %v2235_v15 }
0x2371   :  { %2830 = vpow2.f32 %v2365_v34 }
0x2373   :  { %v2819_v6 = vpop.eup %2818 }
0x2374   :  { %v2269_v18 = vmul.f32 %v2819_v6, %v3453_v16 }
0x2375   :  { %v2821_v19 = vpop.eup %2820 }
0x2376   :  { %v2284_v20 = vadd.f32 %v3458_v17, %v2269_v18  ;;  %v2268_v9 = vmul.f32 %v2821_v19, %v3453_v16 }
0x2377   :  { %v2823_v21 = vpop.eup %2822 }
0x2378   :  { %2292 = vst [vmem:[#allocation10 + $0x8] sm:$0xff] %v2284_v20  ;;  %v2283_v11 = vadd.f32 %v3458_v17, %v2268_v9  ;;  %v2271_v23 = vmul.f32 %v2823_v21, %v3453_v16 }
0x2379   :  { %v2825_v12 = vpop.eup %2824 }
0x237a   :  { %2291 = vst [vmem:[#allocation10] sm:$0xff] %v2283_v11  ;;  %v2286_v24 = vadd.f32 %v3458_v17, %v2271_v23  ;;  %v2270_v26 = vmul.f32 %v2825_v12, %v3453_v16 }
0x237b   :  { %v2827_v27 = vpop.eup %2826 }
0x237c   :  { %2294 = vst [vmem:[#allocation10 + $0x18] sm:$0xff] %v2286_v24  ;;  %v2285_v28 = vadd.f32 %v3458_v17, %v2270_v26  ;;  %v2273_v46 = vmul.f32 %v2827_v27, %v3453_v16 }
0x237d   :  { %v2829_v29 = vpop.eup %2828 }
0x237e   :  { %2293 = vst [vmem:[#allocation10 + $0x10] sm:$0xff] %v2285_v28  ;;  %v2288_v30 = vadd.f32 %v3458_v17, %v2273_v46  ;;  %v2272_v31 = vmul.f32 %v2829_v29, %v3453_v16  ;;  %v2831_v35 = vpop.eup %2830 }
0x237f   :  { %v1972_v10 = vadd.f32 1.0, %v2831_v35 }
0x2380   :  { %2296 = vst [vmem:[#allocation10 + $0x28] sm:$0xff] %v2288_v30  ;;  %v2287_v32 = vadd.f32 %v3458_v17, %v2272_v31 }
0x2381   :  { %2832 = vrcp.f32 %v1972_v10 }
0x2382   :  { %2295 = vst [vmem:[#allocation10 + $0x20] sm:$0xff] %v2287_v32 }
0x238e   :  { %v2833_v36 = vpop.eup %2832 }
0x238f   :  { %v1987_v39 = vsub.f32 1.0, %v2833_v36  ;;  %v1993_v41 = vmul.f32 %v2833_v36, %v3425_v44 }
0x23d0   :  { %v1978_v37 = vpop.permute.xlu0 %1977 }
0x23d1   :  { %v1980_v14 = vmul.f32 %v2833_v36, %v1978_v37 }
0x23d3   :  { %1982 = vrot.lane.b32.xlu1 %v1980_v14, %s2938_s4 }
0x2445   :  { %v1983_v8 = vpop.permute.xlu1 %1982 }
0x2446   :  { %v1985_v13 = vadd.f32 %v1983_v8, %v1895_v7 }
0x2448   :  { %2834 = vtanh.f32 %v1985_v13 }
0x2455   :  { %v2835_v38 = vpop.eup %2834 }
0x2456   :  { %1989 = vrot.lane.b32.xlu0 %v2835_v38, %s2940_s3 }
0x24c8   :  { %v1990_v40 = vpop.permute.xlu0 %1989 }
0x24c9   :  { %v1992_v42 = vmul.f32 %v1990_v40, %v1987_v39 }
0x24cb   :  { %v1994_v43 = vadd.f32 %v1993_v41, %v1992_v42 }
0x24cd   :  { %1996 = vrot.lane.b32.xlu1 %v1994_v43, %s2940_s3 }
0x253f   :  { %v1997_v45 = vpop.permute.xlu1 %1996 }
0x2540   :  { %1999 = vst.msk [vmem:[#allocation2 + $0x30] sm:$0xff] %vm254_vm4, %v1997_v45  ;;  %2700 = vmatmul.mubr.msk.f32.vlgmr.msra.gmra.mxu1 %vm254_vm4, %v1997_v45 }
0x2547   :  { %v2111_v47 = vld [vmem:[#allocation2 + $0x30] sm:$0xff] }
0x2548   :  { %2719 = vmatprep.mubr.msk.f32.mxu0 %vm254_vm4, %v2111_v47 }
0x2600   :  { %v2069_v48 = vpop.f32.mrf.mxu1 }
0x2601   :  { %v2080_v49 = vadd.f32 %v2069_v48, %v3322_v22  ;;  %v2073_v44 = vadd.f32 %v2069_v48, %v2000_v51 }
0x2602   :  { %v2701_v50 = vpop.f32.mrf.mxu1 }
0x2603   :  { %2082 = vrot.lane.b32.xlu0 %v2080_v49, %s2938_s4  ;;  %v2367_v25 = vmul.f32 -1.442695, %v2073_v44 }
0x2605   :  { %2836 = vpow2.f32 %v2367_v25 }
0x2612   :  { %v2837_v52 = vpop.eup %2836 }
0x2613   :  { %v2077_v53 = vadd.f32 1.0, %v2837_v52 }
0x2615   :  { %2838 = vrcp.f32 %v2077_v53 }
0x2622   :  { %v2839_v54 = vpop.eup %2838 }
0x2623   :  { %v2092_v22 = vsub.f32 1.0, %v2839_v54  ;;  %v2098_v62 = vmul.f32 %v2839_v54, %v1994_v43 }
0x2675   :  { %v2083_v55 = vpop.permute.xlu0 %2082 }
0x2676   :  { %v2085_v56 = vmul.f32 %v2839_v54, %v2083_v55 }
0x2678   :  { %2087 = vrot.lane.b32.xlu1 %v2085_v56, %s2938_s4  ;;  %s2906_s4 = scalar_lea.vmem %s2305_s12, 1024 }
0x2679   :  { %p2907_p1 = scmp.ne.s32.totalorder %s2305_s12, %s2906_s4  ;;  %p2912_p3 = scmp.lt.s32.totalorder %s2906_s4, %s2906_s4 }
0x267b   :  { %p2913_p4 = por %p2912_p3, %p2911_p2 }
0x267d   :  { %p2914_p5 = pnand %p2913_p4, %p2907_p1 }
0x26ea   :  { %v2088_v57 = vpop.permute.xlu1 %2087 }
0x26eb   :  { %v2090_v59 = vadd.f32 %v2088_v57, %v2000_v51 }
0x26ed   :  { %2840 = vtanh.f32 %v2090_v59 }
0x26fa   :  { %v2841_v60 = vpop.eup %2840 }
0x26fb   :  { %2094 = vrot.lane.b32.xlu0 %v2841_v60, %s2940_s3 }
0x276d   :  { %v2095_v61 = vpop.permute.xlu0 %2094 }
0x276e   :  { %v2097_v63 = vmul.f32 %v2095_v61, %v2092_v22 }
0x2770   :  { %v2099_v0 = vadd.f32 %v2098_v62, %v2097_v63 }
0x2772   :  { %2101 = vrot.lane.b32.xlu1 %v2099_v0, %s2940_s3 }
0x27e4   :  { %v2102_v1 = vpop.permute.xlu1 %2101 }
0x27e5   :  { %2104 = vst.msk [vmem:[#allocation2 + $0x38] sm:$0xff] %vm254_vm4, %v2102_v1 }
0x27ec   :  { %v2112_v2 = vld [vmem:[#allocation2 + $0x38] sm:$0xff] }
0x27ed   :  { %2720 = vmatmul.mubr.msk.f32.gmra.mxu0 %vm254_vm4, %v2112_v2 }
0x28ad   :  { %v2721_v3 = vpop.f32.mrf.mxu0 }
0x28ae   :  { %v2250_v4 = vadd.f32 %v2721_v3, %v3442_v58 }
0x28af   :  { %v2244_v5 = vpop.f32.mrf.mxu0 }
0x28b0   :  { %2842 = vtanh.f32 %v2250_v4  ;;  %v2245_v15 = vadd.f32 %v3442_v58, %v2244_v5 }
0x28b2   :  { %2844 = vtanh.f32 %v2245_v15 }
0x28bd   :  { %v2843_v6 = vpop.eup %2842 }
0x28be   :  { %v2275_v18 = vmul.f32 %v2843_v6, %v3453_v16 }
0x28bf   :  { %v2845_v19 = vpop.eup %2844 }
0x28c0   :  { %v2290_v20 = vadd.f32 %v3458_v17, %v2275_v18  ;;  %v2274_v9 = vmul.f32 %v2845_v19, %v3453_v16 }
0x28c2   :  { %2298 = vst [vmem:[#allocation10 + $0x38] sm:$0xff] %v2290_v20  ;;  %v2289_v21 = vadd.f32 %v3458_v17, %v2274_v9 }
0x28c4   :  { %2297 = vst [vmem:[#allocation10 + $0x30] sm:$0xff] %v2289_v21 }
0x28c5   :  { %2917 = shalt.err (!%p2914_p5)
}
0x28c6   :  { %2310 = dma.vmem_to_hbm [thread:$0]  %s2305_s12, 1024, %s3511_s13, [#allocation6], %s2933_s28, %s2933_s28, %s2934_s29  }
0x28c7   :  { %2930 = dma.done.wait [#allocation6], 1024  }
0x28c8   :  { %2931 = vsyncadd [#allocation6], 4294966272 }
0x28c9   :  { %2314 = vsyncpa [#allocation5], 1 }
0x28ca   :  { %2315 = vsyncpa [#allocation8], 1 }
0x28cb   :  { %2316 = vsyncpa [#allocation6], 1 }

</bundles_post_ra>
